<compile_context>
chip_gen: v7x
topology: tpu7x:2x2x1
jax: 0.10.0
libtpu: 0.0.40
codegen_flags: <defaults>
</compile_context>

<pallas_src>
import functools
import math

import jax
import jax.numpy as jnp
from jax.experimental import pallas as pl
from jax.experimental.pallas import tpu as pltpu


# ---------------------------------------------------------------------------
# Kernel helpers (traced inside the Pallas kernel body)
# ---------------------------------------------------------------------------
def _layer_norm(x, gamma, beta, eps=1e-5):
    mu = jnp.mean(x, axis=-1, keepdims=True)
    xc = x - mu
    var = jnp.mean(xc * xc, axis=-1, keepdims=True)
    inv = jax.lax.rsqrt(var + eps)
    return xc * inv * gamma + beta


# ---------------------------------------------------------------------------
# Pallas kernel: one full encoder layer for a block of batch elements
# ---------------------------------------------------------------------------
def encoder_layer_kernel(x_ref,
                         w_qkv_ref, b_qkv_ref, w_out_ref, b_out_ref,
                         w_ff1_ref, b_ff1_ref, w_ff2_ref, b_ff2_ref,
                         ln1_g_ref, ln1_b_ref, ln2_g_ref, ln2_b_ref,
                         gate_ref, o_ref, *, n_heads):
    Bb, L, D = x_ref.shape
    H = n_heads
    E = D // H
    M = Bb * L
    scale = 1.0 / math.sqrt(float(E))

    x2 = x_ref[...].reshape(M, D)          # leading-dim collapse (layout no-op)

    # One fused lane-dense projection for BOTH attention branches:
    #   [M, D] @ [D, 6D] with columns  Q1 | K1 | V1 | Q2 | K2 | V2
    qkv = jnp.dot(x2, w_qkv_ref[...],
                  preferred_element_type=jnp.float32) + b_qkv_ref[...]

    def attention_branch(off):
        # off = 0 for attention1, 3*D for attention2 (dense-equivalent ProbAttention).
        heads = []
        for h in range(H):
            # Static loop over heads: at E=8 a batched dot_general would unroll
            # into the same tiny matmuls anyway; this keeps only cheap static
            # lane slices and no per-head partial output-projection dots.
            q = qkv[:, off + h * E: off + (h + 1) * E].reshape(Bb, L, E)
            k = qkv[:, off + D + h * E: off + D + (h + 1) * E].reshape(Bb, L, E)
            v = qkv[:, off + 2 * D + h * E: off + 2 * D + (h + 1) * E].reshape(Bb, L, E)
            s = jnp.einsum("ble,bse->bls", q, k,
                           preferred_element_type=jnp.float32) * scale
            s = s - jnp.max(s, axis=-1, keepdims=True)
            p = jnp.exp(s)
            # softmax denominator on the (otherwise idle) EUP reciprocal slot
            p = p * pl.reciprocal(jnp.sum(p, axis=-1, keepdims=True), approx=True)
            o = jnp.einsum("bls,bse->ble", p, v,
                           preferred_element_type=jnp.float32)      # [Bb, L, E]
            heads.append(o.reshape(M, E))
        return jnp.concatenate(heads, axis=-1)                       # [M, D]

    o1 = attention_branch(0)        # FullAttention branch (pre output-proj)
    o2 = attention_branch(3 * D)    # ProbAttention branch (dense regime)

    # Gate scalar lives in SMEM; sigmoid evaluated on a (1,1) vreg (EUP slot).
    g = jax.nn.sigmoid(jnp.full((1, 1), gate_ref[0], dtype=jnp.float32))

    # Fused output projections of both branches + gate combine:
    #   g*(o1 Wo1 + bo1) + (1-g)*(o2 Wo2 + bo2)
    # = [g*o1 | (1-g)*o2] @ [Wo1 ; Wo2] + g*bo1 + (1-g)*bo2
    gated = jnp.concatenate([g * o1, (1.0 - g) * o2], axis=-1)       # [M, 2D]
    combined = jnp.dot(gated, w_out_ref[...], preferred_element_type=jnp.float32)
    combined = combined + g * b_out_ref[0:1, :] + (1.0 - g) * b_out_ref[1:2, :]

    # residual + norm1  (dropout = identity in eval mode)
    x1 = _layer_norm(x2 + combined, ln1_g_ref[...], ln1_b_ref[...])

    # feed-forward: Linear(D->Dff) -> ReLU -> Linear(Dff->D)
    hmid = jnp.dot(x1, w_ff1_ref[...], preferred_element_type=jnp.float32) + b_ff1_ref[...]
    hmid = jnp.maximum(hmid, 0.0)
    ff = jnp.dot(hmid, w_ff2_ref[...], preferred_element_type=jnp.float32) + b_ff2_ref[...]

    # residual + norm2
    y = _layer_norm(x1 + ff, ln2_g_ref[...], ln2_b_ref[...])
    o_ref[...] = y.reshape(Bb, L, D)


# ---------------------------------------------------------------------------
# Wrapper
# ---------------------------------------------------------------------------
def _full_spec(shape):
    n = len(shape)
    return pl.BlockSpec(shape, lambda b: (0,) * n)


def modified_encoder_layer(x, params, n_heads, block_b=None):
    B, L, D = x.shape
    Dff = params["w_ff1"].shape[-1]

    # ProbAttention(factor=5) is identical to dense attention iff all queries are
    # selected: factor * ceil(ln(L)) >= L. Guard that regime explicitly.
    assert 5 * math.ceil(math.log(L)) >= L, (
        "ProbAttention sparse top-u path not implemented for this sequence length")

    if block_b is None:
        # Pack several sequences per grid step (per-step overhead dominates at
        # tiny L*D). Keep >= 2 grid steps when B allows so both v7x TensorCores
        # get work; v5e/v6e are single-TC so this is a no-op there.
        block_b = B if (B < 4 or B % 2) else B // 2
    assert B % block_b == 0

    # Host-side (one-time) parameter re-layout:
    #   * fuse both branches' Q/K/V projections into one [D, 6D] weight,
    #   * fuse both output projections into one [2D, D] weight (gate combine is
    #     folded into the matmul LHS inside the kernel).
    w1, b1 = params["w_attn1"], params["b_attn1"]
    w2, b2 = params["w_attn2"], params["b_attn2"]
    w_qkv = jnp.concatenate([w1[0], w1[1], w1[2], w2[0], w2[1], w2[2]], axis=-1)  # [D, 6D]
    b_qkv = jnp.concatenate([b1[0], b1[1], b1[2], b2[0], b2[1], b2[2]], axis=-1)  # [1, 6D]
    w_out = jnp.concatenate([w1[3], w2[3]], axis=0)                               # [2D, D]
    b_out = jnp.concatenate([b1[3], b2[3]], axis=0)                               # [2, D]
    gate = params["gate"].reshape(-1)                                             # (1,) -> SMEM

    grid_spec = pltpu.PrefetchScalarGridSpec(
        num_scalar_prefetch=0,
        grid=(B // block_b,),
        in_specs=[
            pl.BlockSpec((block_b, L, D), lambda b: (b, 0, 0)),      # x
            _full_spec((D, 6 * D)), _full_spec((1, 6 * D)),          # fused QKV W, b
            _full_spec((2 * D, D)), _full_spec((2, D)),              # fused Wo, bo
            _full_spec((D, Dff)), _full_spec((1, Dff)),              # FFN layer 1
            _full_spec((Dff, D)), _full_spec((1, D)),                # FFN layer 2
            _full_spec((1, D)), _full_spec((1, D)),                  # LayerNorm1 gamma/beta
            _full_spec((1, D)), _full_spec((1, D)),                  # LayerNorm2 gamma/beta
            pl.BlockSpec(memory_space=pltpu.MemorySpace.SMEM),       # gate scalar
        ],
        out_specs=pl.BlockSpec((block_b, L, D), lambda b: (b, 0, 0)),
    )
    return pl.pallas_call(
        functools.partial(encoder_layer_kernel, n_heads=n_heads),
        out_shape=jax.ShapeDtypeStruct((B, L, D), jnp.float32),
        grid_spec=grid_spec,
        compiler_params=pltpu.CompilerParams(dimension_semantics=("parallel",)),
    )(x, w_qkv, b_qkv, w_out, b_out,
      params["w_ff1"], params["b_ff1"], params["w_ff2"], params["b_ff2"],
      params["ln1_g"], params["ln1_b"], params["ln2_g"], params["ln2_b"],
      gate)


# ---------------------------------------------------------------------------
# Deterministic parameter init (weights stored pre-transposed as [in, out])
# ---------------------------------------------------------------------------
def init_params(key, d_model, d_ff):
    ks = jax.random.split(key, 8)
    s = 0.05
    f32 = jnp.float32
    return {
        "w_attn1": s * jax.random.normal(ks[0], (4, d_model, d_model), f32),
        "b_attn1": s * jax.random.normal(ks[1], (4, 1, d_model), f32),
        "w_attn2": s * jax.random.normal(ks[2], (4, d_model, d_model), f32),
        "b_attn2": s * jax.random.normal(ks[3], (4, 1, d_model), f32),
        "w_ff1":   s * jax.random.normal(ks[4], (d_model, d_ff), f32),
        "b_ff1":   s * jax.random.normal(ks[5], (1, d_ff), f32),
        "w_ff2":   s * jax.random.normal(ks[6], (d_ff, d_model), f32),
        "b_ff2":   s * jax.random.normal(ks[7], (1, d_model), f32),
        "ln1_g":   jnp.ones((1, d_model), f32),
        "ln1_b":   jnp.zeros((1, d_model), f32),
        "ln2_g":   jnp.ones((1, d_model), f32),
        "ln2_b":   jnp.zeros((1, d_model), f32),
        "gate":    jnp.zeros((1, 1), f32),          # nn.Parameter(torch.zeros(1))
    }


# ---------------------------------------------------------------------------
# Pure-JAX reference (mirrors the PyTorch forward, eval mode)
# ---------------------------------------------------------------------------
def ref_forward(x, p, n_heads):
    B, L, D = x.shape
    E = D // n_heads

    def mha(x, w, b):
        q = (x @ w[0] + b[0]).reshape(B, L, n_heads, E)
        k = (x @ w[1] + b[1]).reshape(B, L, n_heads, E)
        v = (x @ w[2] + b[2]).reshape(B, L, n_heads, E)
        s = jnp.einsum("blhe,bshe->bhls", q, k) / math.sqrt(E)
        a = jax.nn.softmax(s, axis=-1)
        o = jnp.einsum("bhls,bshd->blhd", a, v).reshape(B, L, D)
        return o @ w[3] + b[3]

    def ln(x, g, bta):
        mu = x.mean(-1, keepdims=True)
        var = ((x - mu) ** 2).mean(-1, keepdims=True)
        return (x - mu) / jnp.sqrt(var + 1e-5) * g + bta

    a1 = mha(x, p["w_attn1"], p["b_attn1"])
    a2 = mha(x, p["w_attn2"], p["b_attn2"])
    g = jax.nn.sigmoid(p["gate"][0, 0])
    x1 = ln(x + g * a1 + (1.0 - g) * a2, p["ln1_g"], p["ln1_b"])
    h = jnp.maximum(x1 @ p["w_ff1"] + p["b_ff1"], 0.0)
    return ln(x1 + h @ p["w_ff2"] + p["b_ff2"], p["ln2_g"], p["ln2_b"])


if __name__ == "__main__":
    B, L, d_model, n_heads = 2, 8, 32, 4
    d_ff = 4 * d_model

    key = jax.random.PRNGKey(0)
    k_x, k_p = jax.random.split(key)
    x = jax.random.normal(k_x, (B, L, d_model), jnp.float32)
    params = init_params(k_p, d_model, d_ff)

    out = modified_encoder_layer(x, params, n_heads)
    out = jax.block_until_ready(out)

    ref = ref_forward(x, params, n_heads)
    assert out.shape == (B, L, d_model)
    assert jnp.allclose(out, ref, rtol=2e-3, atol=2e-3), (
        f"max abs err = {float(jnp.max(jnp.abs(out - ref)))}")

    print("KERNEL_OK")
</pallas_src>

<mosaic_0001>
module attributes {stable_mosaic.version = 11 : i64} {
  func.func @encoder_layer_kernel(%arg0: i32, %arg1: memref<2x8x32xf32, #tpu.memory_space<vmem>>, %arg2: memref<32x192xf32, #tpu.memory_space<vmem>>, %arg3: memref<1x192xf32, #tpu.memory_space<vmem>>, %arg4: memref<64x32xf32, #tpu.memory_space<vmem>>, %arg5: memref<2x32xf32, #tpu.memory_space<vmem>>, %arg6: memref<32x128xf32, #tpu.memory_space<vmem>>, %arg7: memref<1x128xf32, #tpu.memory_space<vmem>>, %arg8: memref<128x32xf32, #tpu.memory_space<vmem>>, %arg9: memref<1x32xf32, #tpu.memory_space<vmem>>, %arg10: memref<1x32xf32, #tpu.memory_space<vmem>>, %arg11: memref<1x32xf32, #tpu.memory_space<vmem>>, %arg12: memref<1x32xf32, #tpu.memory_space<vmem>>, %arg13: memref<1x32xf32, #tpu.memory_space<vmem>>, %arg14: memref<1xf32, #tpu.memory_space<smem>>, %arg15: memref<2x8x32xf32, #tpu.memory_space<vmem>>) attributes {dimension_semantics = [#tpu.dimension_semantics<parallel>], iteration_bounds = array<i64: 1>, scalar_prefetch = 0 : i64, scratch_operands = 0 : i64, tpu.core_type = #tpu.core_type<tc>, window_params = [{transform_indices = @transform_0, window_bounds = array<i64: 2, 8, 32>}, {pipeline_mode = #tpu.pipeline_mode<synchronous>, transform_indices = @transform_1, window_bounds = array<i64: 32, 192>}, {pipeline_mode = #tpu.pipeline_mode<synchronous>, transform_indices = @transform_2, window_bounds = array<i64: 1, 192>}, {pipeline_mode = #tpu.pipeline_mode<synchronous>, transform_indices = @transform_3, window_bounds = array<i64: 64, 32>}, {pipeline_mode = #tpu.pipeline_mode<synchronous>, transform_indices = @transform_4, window_bounds = array<i64: 2, 32>}, {pipeline_mode = #tpu.pipeline_mode<synchronous>, transform_indices = @transform_5, window_bounds = array<i64: 32, 128>}, {pipeline_mode = #tpu.pipeline_mode<synchronous>, transform_indices = @transform_6, window_bounds = array<i64: 1, 128>}, {pipeline_mode = #tpu.pipeline_mode<synchronous>, transform_indices = @transform_7, window_bounds = array<i64: 128, 32>}, {pipeline_mode = #tpu.pipeline_mode<synchronous>, transform_indices = @transform_8, window_bounds = array<i64: 1, 32>}, {pipeline_mode = #tpu.pipeline_mode<synchronous>, transform_indices = @transform_9, window_bounds = array<i64: 1, 32>}, {pipeline_mode = #tpu.pipeline_mode<synchronous>, transform_indices = @transform_10, window_bounds = array<i64: 1, 32>}, {pipeline_mode = #tpu.pipeline_mode<synchronous>, transform_indices = @transform_11, window_bounds = array<i64: 1, 32>}, {pipeline_mode = #tpu.pipeline_mode<synchronous>, transform_indices = @transform_12, window_bounds = array<i64: 1, 32>}, {transform_indices = @transform_13, window_bounds = array<i64: 1>}, {transform_indices = @transform_14, window_bounds = array<i64: 2, 8, 32>}]} {
    %c0 = arith.constant 0 : index
    %c0_0 = arith.constant 0 : index
    %c0_1 = arith.constant 0 : index
    %0 = vector.load %arg1[%c0, %c0_0, %c0_1] : memref<2x8x32xf32, #tpu.memory_space<vmem>>, vector<2x8x32xf32>
    %1 = vector.shape_cast %0 : vector<2x8x32xf32> to vector<16x32xf32>
    %c0_2 = arith.constant 0 : index
    %c0_3 = arith.constant 0 : index
    %2 = vector.load %arg2[%c0_2, %c0_3] : memref<32x192xf32, #tpu.memory_space<vmem>>, vector<32x192xf32>
    %cst = arith.constant dense<0.000000e+00> : vector<16x192xf32>
    %3 = tpu.matmul %1, %2, %cst {dimension_numbers = #tpu.dot_dimension_numbers<[1], [0], [0], [1], [0, 0, 1, 1], [], []>} : vector<16x32xf32>, vector<32x192xf32>, vector<16x192xf32> -> vector<16x192xf32>
    %c0_4 = arith.constant 0 : index
    %c0_5 = arith.constant 0 : index
    %4 = vector.load %arg3[%c0_4, %c0_5] : memref<1x192xf32, #tpu.memory_space<vmem>>, vector<1x192xf32>
    %5 = vector.broadcast %4 : vector<1x192xf32> to vector<16x192xf32>
    %6 = arith.addf %3, %5 : vector<16x192xf32>
    %7 = vector.extract_strided_slice %6 {offsets = [0, 0], sizes = [16, 8], strides = [1, 1]} : vector<16x192xf32> to vector<16x8xf32>
    %8 = vector.shape_cast %7 : vector<16x8xf32> to vector<2x8x8xf32>
    %9 = vector.extract_strided_slice %6 {offsets = [0, 32], sizes = [16, 8], strides = [1, 1]} : vector<16x192xf32> to vector<16x8xf32>
    %10 = vector.shape_cast %9 : vector<16x8xf32> to vector<2x8x8xf32>
    %11 = vector.extract_strided_slice %6 {offsets = [0, 64], sizes = [16, 8], strides = [1, 1]} : vector<16x192xf32> to vector<16x8xf32>
    %12 = vector.shape_cast %11 : vector<16x8xf32> to vector<2x8x8xf32>
    "tpu.trace_start"() <{level = 10 : i32, message = "ble,bse->bls"}> : () -> ()
    %cst_6 = arith.constant dense<0.000000e+00> : vector<2x8x8xf32>
    %13 = tpu.matmul %8, %10, %cst_6 {dimension_numbers = #tpu.dot_dimension_numbers<[2], [2], [1], [1], [0, 0, 0, 1, 1, 1], [0], [0]>} : vector<2x8x8xf32>, vector<2x8x8xf32>, vector<2x8x8xf32> -> vector<2x8x8xf32>
    "tpu.trace_stop"() : () -> ()
    %cst_7 = arith.constant 0.353553385 : f32
    %14 = vector.broadcast %cst_7 : f32 to vector<2x8x8xf32>
    %15 = arith.mulf %13, %14 : vector<2x8x8xf32>
    %cst_8 = arith.constant dense<0xFF800000> : vector<2x8xf32>
    %16 = vector.multi_reduction <maximumf>, %15, %cst_8 [2] : vector<2x8x8xf32> to vector<2x8xf32>
    %17 = vector.shape_cast %16 : vector<2x8xf32> to vector<2x8x1xf32>
    %18 = vector.broadcast %17 : vector<2x8x1xf32> to vector<2x8x8xf32>
    %19 = arith.subf %15, %18 : vector<2x8x8xf32>
    %20 = math.exp %19 : vector<2x8x8xf32>
    %cst_9 = arith.constant dense<0.000000e+00> : vector<2x8xf32>
    %21 = vector.multi_reduction <add>, %20, %cst_9 [2] : vector<2x8x8xf32> to vector<2x8xf32>
    %22 = vector.shape_cast %21 : vector<2x8xf32> to vector<2x8x1xf32>
    %23 = tpu.reciprocal %22 {approx = true} : vector<2x8x1xf32> -> vector<2x8x1xf32>
    %24 = vector.broadcast %23 : vector<2x8x1xf32> to vector<2x8x8xf32>
    %25 = arith.mulf %20, %24 : vector<2x8x8xf32>
    "tpu.trace_start"() <{level = 10 : i32, message = "bls,bse->ble"}> : () -> ()
    %cst_10 = arith.constant dense<0.000000e+00> : vector<2x8x8xf32>
    %26 = tpu.matmul %25, %12, %cst_10 {dimension_numbers = #tpu.dot_dimension_numbers<[2], [1], [1], [2], [0, 0, 0, 1, 1, 2], [0], [0]>} : vector<2x8x8xf32>, vector<2x8x8xf32>, vector<2x8x8xf32> -> vector<2x8x8xf32>
    "tpu.trace_stop"() : () -> ()
    %27 = vector.shape_cast %26 : vector<2x8x8xf32> to vector<16x8xf32>
    %28 = vector.extract_strided_slice %6 {offsets = [0, 8], sizes = [16, 8], strides = [1, 1]} : vector<16x192xf32> to vector<16x8xf32>
    %29 = vector.shape_cast %28 : vector<16x8xf32> to vector<2x8x8xf32>
    %30 = vector.extract_strided_slice %6 {offsets = [0, 40], sizes = [16, 8], strides = [1, 1]} : vector<16x192xf32> to vector<16x8xf32>
    %31 = vector.shape_cast %30 : vector<16x8xf32> to vector<2x8x8xf32>
    %32 = vector.extract_strided_slice %6 {offsets = [0, 72], sizes = [16, 8], strides = [1, 1]} : vector<16x192xf32> to vector<16x8xf32>
    %33 = vector.shape_cast %32 : vector<16x8xf32> to vector<2x8x8xf32>
    "tpu.trace_start"() <{level = 10 : i32, message = "ble,bse->bls"}> : () -> ()
    %cst_11 = arith.constant dense<0.000000e+00> : vector<2x8x8xf32>
    %34 = tpu.matmul %29, %31, %cst_11 {dimension_numbers = #tpu.dot_dimension_numbers<[2], [2], [1], [1], [0, 0, 0, 1, 1, 1], [0], [0]>} : vector<2x8x8xf32>, vector<2x8x8xf32>, vector<2x8x8xf32> -> vector<2x8x8xf32>
    "tpu.trace_stop"() : () -> ()
    %cst_12 = arith.constant 0.353553385 : f32
    %35 = vector.broadcast %cst_12 : f32 to vector<2x8x8xf32>
    %36 = arith.mulf %34, %35 : vector<2x8x8xf32>
    %cst_13 = arith.constant dense<0xFF800000> : vector<2x8xf32>
    %37 = vector.multi_reduction <maximumf>, %36, %cst_13 [2] : vector<2x8x8xf32> to vector<2x8xf32>
    %38 = vector.shape_cast %37 : vector<2x8xf32> to vector<2x8x1xf32>
    %39 = vector.broadcast %38 : vector<2x8x1xf32> to vector<2x8x8xf32>
    %40 = arith.subf %36, %39 : vector<2x8x8xf32>
    %41 = math.exp %40 : vector<2x8x8xf32>
    %cst_14 = arith.constant dense<0.000000e+00> : vector<2x8xf32>
    %42 = vector.multi_reduction <add>, %41, %cst_14 [2] : vector<2x8x8xf32> to vector<2x8xf32>
    %43 = vector.shape_cast %42 : vector<2x8xf32> to vector<2x8x1xf32>
    %44 = tpu.reciprocal %43 {approx = true} : vector<2x8x1xf32> -> vector<2x8x1xf32>
    %45 = vector.broadcast %44 : vector<2x8x1xf32> to vector<2x8x8xf32>
    %46 = arith.mulf %41, %45 : vector<2x8x8xf32>
    "tpu.trace_start"() <{level = 10 : i32, message = "bls,bse->ble"}> : () -> ()
    %cst_15 = arith.constant dense<0.000000e+00> : vector<2x8x8xf32>
    %47 = tpu.matmul %46, %33, %cst_15 {dimension_numbers = #tpu.dot_dimension_numbers<[2], [1], [1], [2], [0, 0, 0, 1, 1, 2], [0], [0]>} : vector<2x8x8xf32>, vector<2x8x8xf32>, vector<2x8x8xf32> -> vector<2x8x8xf32>
    "tpu.trace_stop"() : () -> ()
    %48 = vector.shape_cast %47 : vector<2x8x8xf32> to vector<16x8xf32>
    %49 = vector.extract_strided_slice %6 {offsets = [0, 16], sizes = [16, 8], strides = [1, 1]} : vector<16x192xf32> to vector<16x8xf32>
    %50 = vector.shape_cast %49 : vector<16x8xf32> to vector<2x8x8xf32>
    %51 = vector.extract_strided_slice %6 {offsets = [0, 48], sizes = [16, 8], strides = [1, 1]} : vector<16x192xf32> to vector<16x8xf32>
    %52 = vector.shape_cast %51 : vector<16x8xf32> to vector<2x8x8xf32>
    %53 = vector.extract_strided_slice %6 {offsets = [0, 80], sizes = [16, 8], strides = [1, 1]} : vector<16x192xf32> to vector<16x8xf32>
    %54 = vector.shape_cast %53 : vector<16x8xf32> to vector<2x8x8xf32>
    "tpu.trace_start"() <{level = 10 : i32, message = "ble,bse->bls"}> : () -> ()
    %cst_16 = arith.constant dense<0.000000e+00> : vector<2x8x8xf32>
    %55 = tpu.matmul %50, %52, %cst_16 {dimension_numbers = #tpu.dot_dimension_numbers<[2], [2], [1], [1], [0, 0, 0, 1, 1, 1], [0], [0]>} : vector<2x8x8xf32>, vector<2x8x8xf32>, vector<2x8x8xf32> -> vector<2x8x8xf32>
    "tpu.trace_stop"() : () -> ()
    %cst_17 = arith.constant 0.353553385 : f32
    %56 = vector.broadcast %cst_17 : f32 to vector<2x8x8xf32>
    %57 = arith.mulf %55, %56 : vector<2x8x8xf32>
    %cst_18 = arith.constant dense<0xFF800000> : vector<2x8xf32>
    %58 = vector.multi_reduction <maximumf>, %57, %cst_18 [2] : vector<2x8x8xf32> to vector<2x8xf32>
    %59 = vector.shape_cast %58 : vector<2x8xf32> to vector<2x8x1xf32>
    %60 = vector.broadcast %59 : vector<2x8x1xf32> to vector<2x8x8xf32>
    %61 = arith.subf %57, %60 : vector<2x8x8xf32>
    %62 = math.exp %61 : vector<2x8x8xf32>
    %cst_19 = arith.constant dense<0.000000e+00> : vector<2x8xf32>
    %63 = vector.multi_reduction <add>, %62, %cst_19 [2] : vector<2x8x8xf32> to vector<2x8xf32>
    %64 = vector.shape_cast %63 : vector<2x8xf32> to vector<2x8x1xf32>
    %65 = tpu.reciprocal %64 {approx = true} : vector<2x8x1xf32> -> vector<2x8x1xf32>
    %66 = vector.broadcast %65 : vector<2x8x1xf32> to vector<2x8x8xf32>
    %67 = arith.mulf %62, %66 : vector<2x8x8xf32>
    "tpu.trace_start"() <{level = 10 : i32, message = "bls,bse->ble"}> : () -> ()
    %cst_20 = arith.constant dense<0.000000e+00> : vector<2x8x8xf32>
    %68 = tpu.matmul %67, %54, %cst_20 {dimension_numbers = #tpu.dot_dimension_numbers<[2], [1], [1], [2], [0, 0, 0, 1, 1, 2], [0], [0]>} : vector<2x8x8xf32>, vector<2x8x8xf32>, vector<2x8x8xf32> -> vector<2x8x8xf32>
    "tpu.trace_stop"() : () -> ()
    %69 = vector.shape_cast %68 : vector<2x8x8xf32> to vector<16x8xf32>
    %70 = vector.extract_strided_slice %6 {offsets = [0, 24], sizes = [16, 8], strides = [1, 1]} : vector<16x192xf32> to vector<16x8xf32>
    %71 = vector.shape_cast %70 : vector<16x8xf32> to vector<2x8x8xf32>
    %72 = vector.extract_strided_slice %6 {offsets = [0, 56], sizes = [16, 8], strides = [1, 1]} : vector<16x192xf32> to vector<16x8xf32>
    %73 = vector.shape_cast %72 : vector<16x8xf32> to vector<2x8x8xf32>
    %74 = vector.extract_strided_slice %6 {offsets = [0, 88], sizes = [16, 8], strides = [1, 1]} : vector<16x192xf32> to vector<16x8xf32>
    %75 = vector.shape_cast %74 : vector<16x8xf32> to vector<2x8x8xf32>
    "tpu.trace_start"() <{level = 10 : i32, message = "ble,bse->bls"}> : () -> ()
    %cst_21 = arith.constant dense<0.000000e+00> : vector<2x8x8xf32>
    %76 = tpu.matmul %71, %73, %cst_21 {dimension_numbers = #tpu.dot_dimension_numbers<[2], [2], [1], [1], [0, 0, 0, 1, 1, 1], [0], [0]>} : vector<2x8x8xf32>, vector<2x8x8xf32>, vector<2x8x8xf32> -> vector<2x8x8xf32>
    "tpu.trace_stop"() : () -> ()
    %cst_22 = arith.constant 0.353553385 : f32
    %77 = vector.broadcast %cst_22 : f32 to vector<2x8x8xf32>
    %78 = arith.mulf %76, %77 : vector<2x8x8xf32>
    %cst_23 = arith.constant dense<0xFF800000> : vector<2x8xf32>
    %79 = vector.multi_reduction <maximumf>, %78, %cst_23 [2] : vector<2x8x8xf32> to vector<2x8xf32>
    %80 = vector.shape_cast %79 : vector<2x8xf32> to vector<2x8x1xf32>
    %81 = vector.broadcast %80 : vector<2x8x1xf32> to vector<2x8x8xf32>
    %82 = arith.subf %78, %81 : vector<2x8x8xf32>
    %83 = math.exp %82 : vector<2x8x8xf32>
    %cst_24 = arith.constant dense<0.000000e+00> : vector<2x8xf32>
    %84 = vector.multi_reduction <add>, %83, %cst_24 [2] : vector<2x8x8xf32> to vector<2x8xf32>
    %85 = vector.shape_cast %84 : vector<2x8xf32> to vector<2x8x1xf32>
    %86 = tpu.reciprocal %85 {approx = true} : vector<2x8x1xf32> -> vector<2x8x1xf32>
    %87 = vector.broadcast %86 : vector<2x8x1xf32> to vector<2x8x8xf32>
    %88 = arith.mulf %83, %87 : vector<2x8x8xf32>
    "tpu.trace_start"() <{level = 10 : i32, message = "bls,bse->ble"}> : () -> ()
    %cst_25 = arith.constant dense<0.000000e+00> : vector<2x8x8xf32>
    %89 = tpu.matmul %88, %75, %cst_25 {dimension_numbers = #tpu.dot_dimension_numbers<[2], [1], [1], [2], [0, 0, 0, 1, 1, 2], [0], [0]>} : vector<2x8x8xf32>, vector<2x8x8xf32>, vector<2x8x8xf32> -> vector<2x8x8xf32>
    "tpu.trace_stop"() : () -> ()
    %90 = vector.shape_cast %89 : vector<2x8x8xf32> to vector<16x8xf32>
    %91 = tpu.concatenate %27, %48, %69, %90 in 1 : vector<16x8xf32>, vector<16x8xf32>, vector<16x8xf32>, vector<16x8xf32> -> vector<16x32xf32>
    %92 = vector.extract_strided_slice %6 {offsets = [0, 96], sizes = [16, 8], strides = [1, 1]} : vector<16x192xf32> to vector<16x8xf32>
    %93 = vector.shape_cast %92 : vector<16x8xf32> to vector<2x8x8xf32>
    %94 = vector.extract_strided_slice %6 {offsets = [0, 128], sizes = [16, 8], strides = [1, 1]} : vector<16x192xf32> to vector<16x8xf32>
    %95 = vector.shape_cast %94 : vector<16x8xf32> to vector<2x8x8xf32>
    %96 = vector.extract_strided_slice %6 {offsets = [0, 160], sizes = [16, 8], strides = [1, 1]} : vector<16x192xf32> to vector<16x8xf32>
    %97 = vector.shape_cast %96 : vector<16x8xf32> to vector<2x8x8xf32>
    "tpu.trace_start"() <{level = 10 : i32, message = "ble,bse->bls"}> : () -> ()
    %cst_26 = arith.constant dense<0.000000e+00> : vector<2x8x8xf32>
    %98 = tpu.matmul %93, %95, %cst_26 {dimension_numbers = #tpu.dot_dimension_numbers<[2], [2], [1], [1], [0, 0, 0, 1, 1, 1], [0], [0]>} : vector<2x8x8xf32>, vector<2x8x8xf32>, vector<2x8x8xf32> -> vector<2x8x8xf32>
    "tpu.trace_stop"() : () -> ()
    %cst_27 = arith.constant 0.353553385 : f32
    %99 = vector.broadcast %cst_27 : f32 to vector<2x8x8xf32>
    %100 = arith.mulf %98, %99 : vector<2x8x8xf32>
    %cst_28 = arith.constant dense<0xFF800000> : vector<2x8xf32>
    %101 = vector.multi_reduction <maximumf>, %100, %cst_28 [2] : vector<2x8x8xf32> to vector<2x8xf32>
    %102 = vector.shape_cast %101 : vector<2x8xf32> to vector<2x8x1xf32>
    %103 = vector.broadcast %102 : vector<2x8x1xf32> to vector<2x8x8xf32>
    %104 = arith.subf %100, %103 : vector<2x8x8xf32>
    %105 = math.exp %104 : vector<2x8x8xf32>
    %cst_29 = arith.constant dense<0.000000e+00> : vector<2x8xf32>
    %106 = vector.multi_reduction <add>, %105, %cst_29 [2] : vector<2x8x8xf32> to vector<2x8xf32>
    %107 = vector.shape_cast %106 : vector<2x8xf32> to vector<2x8x1xf32>
    %108 = tpu.reciprocal %107 {approx = true} : vector<2x8x1xf32> -> vector<2x8x1xf32>
    %109 = vector.broadcast %108 : vector<2x8x1xf32> to vector<2x8x8xf32>
    %110 = arith.mulf %105, %109 : vector<2x8x8xf32>
    "tpu.trace_start"() <{level = 10 : i32, message = "bls,bse->ble"}> : () -> ()
    %cst_30 = arith.constant dense<0.000000e+00> : vector<2x8x8xf32>
    %111 = tpu.matmul %110, %97, %cst_30 {dimension_numbers = #tpu.dot_dimension_numbers<[2], [1], [1], [2], [0, 0, 0, 1, 1, 2], [0], [0]>} : vector<2x8x8xf32>, vector<2x8x8xf32>, vector<2x8x8xf32> -> vector<2x8x8xf32>
    "tpu.trace_stop"() : () -> ()
    %112 = vector.shape_cast %111 : vector<2x8x8xf32> to vector<16x8xf32>
    %113 = vector.extract_strided_slice %6 {offsets = [0, 104], sizes = [16, 8], strides = [1, 1]} : vector<16x192xf32> to vector<16x8xf32>
    %114 = vector.shape_cast %113 : vector<16x8xf32> to vector<2x8x8xf32>
    %115 = vector.extract_strided_slice %6 {offsets = [0, 136], sizes = [16, 8], strides = [1, 1]} : vector<16x192xf32> to vector<16x8xf32>
    %116 = vector.shape_cast %115 : vector<16x8xf32> to vector<2x8x8xf32>
    %117 = vector.extract_strided_slice %6 {offsets = [0, 168], sizes = [16, 8], strides = [1, 1]} : vector<16x192xf32> to vector<16x8xf32>
    %118 = vector.shape_cast %117 : vector<16x8xf32> to vector<2x8x8xf32>
    "tpu.trace_start"() <{level = 10 : i32, message = "ble,bse->bls"}> : () -> ()
    %cst_31 = arith.constant dense<0.000000e+00> : vector<2x8x8xf32>
    %119 = tpu.matmul %114, %116, %cst_31 {dimension_numbers = #tpu.dot_dimension_numbers<[2], [2], [1], [1], [0, 0, 0, 1, 1, 1], [0], [0]>} : vector<2x8x8xf32>, vector<2x8x8xf32>, vector<2x8x8xf32> -> vector<2x8x8xf32>
    "tpu.trace_stop"() : () -> ()
    %cst_32 = arith.constant 0.353553385 : f32
    %120 = vector.broadcast %cst_32 : f32 to vector<2x8x8xf32>
    %121 = arith.mulf %119, %120 : vector<2x8x8xf32>
    %cst_33 = arith.constant dense<0xFF800000> : vector<2x8xf32>
    %122 = vector.multi_reduction <maximumf>, %121, %cst_33 [2] : vector<2x8x8xf32> to vector<2x8xf32>
    %123 = vector.shape_cast %122 : vector<2x8xf32> to vector<2x8x1xf32>
    %124 = vector.broadcast %123 : vector<2x8x1xf32> to vector<2x8x8xf32>
    %125 = arith.subf %121, %124 : vector<2x8x8xf32>
    %126 = math.exp %125 : vector<2x8x8xf32>
    %cst_34 = arith.constant dense<0.000000e+00> : vector<2x8xf32>
    %127 = vector.multi_reduction <add>, %126, %cst_34 [2] : vector<2x8x8xf32> to vector<2x8xf32>
    %128 = vector.shape_cast %127 : vector<2x8xf32> to vector<2x8x1xf32>
    %129 = tpu.reciprocal %128 {approx = true} : vector<2x8x1xf32> -> vector<2x8x1xf32>
    %130 = vector.broadcast %129 : vector<2x8x1xf32> to vector<2x8x8xf32>
    %131 = arith.mulf %126, %130 : vector<2x8x8xf32>
    "tpu.trace_start"() <{level = 10 : i32, message = "bls,bse->ble"}> : () -> ()
    %cst_35 = arith.constant dense<0.000000e+00> : vector<2x8x8xf32>
    %132 = tpu.matmul %131, %118, %cst_35 {dimension_numbers = #tpu.dot_dimension_numbers<[2], [1], [1], [2], [0, 0, 0, 1, 1, 2], [0], [0]>} : vector<2x8x8xf32>, vector<2x8x8xf32>, vector<2x8x8xf32> -> vector<2x8x8xf32>
    "tpu.trace_stop"() : () -> ()
    %133 = vector.shape_cast %132 : vector<2x8x8xf32> to vector<16x8xf32>
    %134 = vector.extract_strided_slice %6 {offsets = [0, 112], sizes = [16, 8], strides = [1, 1]} : vector<16x192xf32> to vector<16x8xf32>
    %135 = vector.shape_cast %134 : vector<16x8xf32> to vector<2x8x8xf32>
    %136 = vector.extract_strided_slice %6 {offsets = [0, 144], sizes = [16, 8], strides = [1, 1]} : vector<16x192xf32> to vector<16x8xf32>
    %137 = vector.shape_cast %136 : vector<16x8xf32> to vector<2x8x8xf32>
    %138 = vector.extract_strided_slice %6 {offsets = [0, 176], sizes = [16, 8], strides = [1, 1]} : vector<16x192xf32> to vector<16x8xf32>
    %139 = vector.shape_cast %138 : vector<16x8xf32> to vector<2x8x8xf32>
    "tpu.trace_start"() <{level = 10 : i32, message = "ble,bse->bls"}> : () -> ()
    %cst_36 = arith.constant dense<0.000000e+00> : vector<2x8x8xf32>
    %140 = tpu.matmul %135, %137, %cst_36 {dimension_numbers = #tpu.dot_dimension_numbers<[2], [2], [1], [1], [0, 0, 0, 1, 1, 1], [0], [0]>} : vector<2x8x8xf32>, vector<2x8x8xf32>, vector<2x8x8xf32> -> vector<2x8x8xf32>
    "tpu.trace_stop"() : () -> ()
    %cst_37 = arith.constant 0.353553385 : f32
    %141 = vector.broadcast %cst_37 : f32 to vector<2x8x8xf32>
    %142 = arith.mulf %140, %141 : vector<2x8x8xf32>
    %cst_38 = arith.constant dense<0xFF800000> : vector<2x8xf32>
    %143 = vector.multi_reduction <maximumf>, %142, %cst_38 [2] : vector<2x8x8xf32> to vector<2x8xf32>
    %144 = vector.shape_cast %143 : vector<2x8xf32> to vector<2x8x1xf32>
    %145 = vector.broadcast %144 : vector<2x8x1xf32> to vector<2x8x8xf32>
    %146 = arith.subf %142, %145 : vector<2x8x8xf32>
    %147 = math.exp %146 : vector<2x8x8xf32>
    %cst_39 = arith.constant dense<0.000000e+00> : vector<2x8xf32>
    %148 = vector.multi_reduction <add>, %147, %cst_39 [2] : vector<2x8x8xf32> to vector<2x8xf32>
    %149 = vector.shape_cast %148 : vector<2x8xf32> to vector<2x8x1xf32>
    %150 = tpu.reciprocal %149 {approx = true} : vector<2x8x1xf32> -> vector<2x8x1xf32>
    %151 = vector.broadcast %150 : vector<2x8x1xf32> to vector<2x8x8xf32>
    %152 = arith.mulf %147, %151 : vector<2x8x8xf32>
    "tpu.trace_start"() <{level = 10 : i32, message = "bls,bse->ble"}> : () -> ()
    %cst_40 = arith.constant dense<0.000000e+00> : vector<2x8x8xf32>
    %153 = tpu.matmul %152, %139, %cst_40 {dimension_numbers = #tpu.dot_dimension_numbers<[2], [1], [1], [2], [0, 0, 0, 1, 1, 2], [0], [0]>} : vector<2x8x8xf32>, vector<2x8x8xf32>, vector<2x8x8xf32> -> vector<2x8x8xf32>
    "tpu.trace_stop"() : () -> ()
    %154 = vector.shape_cast %153 : vector<2x8x8xf32> to vector<16x8xf32>
    %155 = vector.extract_strided_slice %6 {offsets = [0, 120], sizes = [16, 8], strides = [1, 1]} : vector<16x192xf32> to vector<16x8xf32>
    %156 = vector.shape_cast %155 : vector<16x8xf32> to vector<2x8x8xf32>
    %157 = vector.extract_strided_slice %6 {offsets = [0, 152], sizes = [16, 8], strides = [1, 1]} : vector<16x192xf32> to vector<16x8xf32>
    %158 = vector.shape_cast %157 : vector<16x8xf32> to vector<2x8x8xf32>
    %159 = vector.extract_strided_slice %6 {offsets = [0, 184], sizes = [16, 8], strides = [1, 1]} : vector<16x192xf32> to vector<16x8xf32>
    %160 = vector.shape_cast %159 : vector<16x8xf32> to vector<2x8x8xf32>
    "tpu.trace_start"() <{level = 10 : i32, message = "ble,bse->bls"}> : () -> ()
    %cst_41 = arith.constant dense<0.000000e+00> : vector<2x8x8xf32>
    %161 = tpu.matmul %156, %158, %cst_41 {dimension_numbers = #tpu.dot_dimension_numbers<[2], [2], [1], [1], [0, 0, 0, 1, 1, 1], [0], [0]>} : vector<2x8x8xf32>, vector<2x8x8xf32>, vector<2x8x8xf32> -> vector<2x8x8xf32>
    "tpu.trace_stop"() : () -> ()
    %cst_42 = arith.constant 0.353553385 : f32
    %162 = vector.broadcast %cst_42 : f32 to vector<2x8x8xf32>
    %163 = arith.mulf %161, %162 : vector<2x8x8xf32>
    %cst_43 = arith.constant dense<0xFF800000> : vector<2x8xf32>
    %164 = vector.multi_reduction <maximumf>, %163, %cst_43 [2] : vector<2x8x8xf32> to vector<2x8xf32>
    %165 = vector.shape_cast %164 : vector<2x8xf32> to vector<2x8x1xf32>
    %166 = vector.broadcast %165 : vector<2x8x1xf32> to vector<2x8x8xf32>
    %167 = arith.subf %163, %166 : vector<2x8x8xf32>
    %168 = math.exp %167 : vector<2x8x8xf32>
    %cst_44 = arith.constant dense<0.000000e+00> : vector<2x8xf32>
    %169 = vector.multi_reduction <add>, %168, %cst_44 [2] : vector<2x8x8xf32> to vector<2x8xf32>
    %170 = vector.shape_cast %169 : vector<2x8xf32> to vector<2x8x1xf32>
    %171 = tpu.reciprocal %170 {approx = true} : vector<2x8x1xf32> -> vector<2x8x1xf32>
    %172 = vector.broadcast %171 : vector<2x8x1xf32> to vector<2x8x8xf32>
    %173 = arith.mulf %168, %172 : vector<2x8x8xf32>
    "tpu.trace_start"() <{level = 10 : i32, message = "bls,bse->ble"}> : () -> ()
    %cst_45 = arith.constant dense<0.000000e+00> : vector<2x8x8xf32>
    %174 = tpu.matmul %173, %160, %cst_45 {dimension_numbers = #tpu.dot_dimension_numbers<[2], [1], [1], [2], [0, 0, 0, 1, 1, 2], [0], [0]>} : vector<2x8x8xf32>, vector<2x8x8xf32>, vector<2x8x8xf32> -> vector<2x8x8xf32>
    "tpu.trace_stop"() : () -> ()
    %175 = vector.shape_cast %174 : vector<2x8x8xf32> to vector<16x8xf32>
    %176 = tpu.concatenate %112, %133, %154, %175 in 1 : vector<16x8xf32>, vector<16x8xf32>, vector<16x8xf32>, vector<16x8xf32> -> vector<16x32xf32>
    %c0_46 = arith.constant 0 : index
    %177 = memref.load %arg14[%c0_46] : memref<1xf32, #tpu.memory_space<smem>>
    %178 = vector.broadcast %177 : f32 to vector<1x1xf32>
    %179 = arith.negf %178 : vector<1x1xf32>
    %180 = math.exp %179 : vector<1x1xf32>
    %cst_47 = arith.constant 1.000000e+00 : f32
    %181 = vector.broadcast %cst_47 : f32 to vector<1x1xf32>
    %182 = arith.addf %181, %180 : vector<1x1xf32>
    %183 = arith.divf %181, %182 : vector<1x1xf32>
    %184 = vector.broadcast %183 : vector<1x1xf32> to vector<16x32xf32>
    %185 = arith.mulf %184, %91 : vector<16x32xf32>
    %cst_48 = arith.constant 1.000000e+00 : f32
    %186 = vector.broadcast %cst_48 : f32 to vector<1x1xf32>
    %187 = arith.subf %186, %183 : vector<1x1xf32>
    %188 = vector.broadcast %187 : vector<1x1xf32> to vector<16x32xf32>
    %189 = arith.mulf %188, %176 : vector<16x32xf32>
    %190 = tpu.concatenate %185, %189 in 1 : vector<16x32xf32>, vector<16x32xf32> -> vector<16x64xf32>
    %c0_49 = arith.constant 0 : index
    %c0_50 = arith.constant 0 : index
    %191 = vector.load %arg4[%c0_49, %c0_50] : memref<64x32xf32, #tpu.memory_space<vmem>>, vector<64x32xf32>
    %cst_51 = arith.constant dense<0.000000e+00> : vector<16x32xf32>
    %192 = tpu.matmul %190, %191, %cst_51 {dimension_numbers = #tpu.dot_dimension_numbers<[1], [0], [0], [1], [0, 0, 1, 1], [], []>} : vector<16x64xf32>, vector<64x32xf32>, vector<16x32xf32> -> vector<16x32xf32>
    %c0_52 = arith.constant 0 : index
    %c0_53 = arith.constant 0 : index
    %193 = vector.load %arg5[%c0_52, %c0_53] : memref<2x32xf32, #tpu.memory_space<vmem>>, vector<1x32xf32>
    %194 = vector.broadcast %183 : vector<1x1xf32> to vector<1x32xf32>
    %195 = arith.mulf %194, %193 : vector<1x32xf32>
    %196 = vector.broadcast %195 : vector<1x32xf32> to vector<16x32xf32>
    %197 = arith.addf %192, %196 : vector<16x32xf32>
    %cst_54 = arith.constant 1.000000e+00 : f32
    %198 = vector.broadcast %cst_54 : f32 to vector<1x1xf32>
    %199 = arith.subf %198, %183 : vector<1x1xf32>
    %c1 = arith.constant 1 : index
    %c0_55 = arith.constant 0 : index
    %200 = vector.load %arg5[%c1, %c0_55] : memref<2x32xf32, #tpu.memory_space<vmem>>, vector<1x32xf32>
    %201 = vector.broadcast %199 : vector<1x1xf32> to vector<1x32xf32>
    %202 = arith.mulf %201, %200 : vector<1x32xf32>
    %203 = vector.broadcast %202 : vector<1x32xf32> to vector<16x32xf32>
    %204 = arith.addf %197, %203 : vector<16x32xf32>
    %205 = arith.addf %1, %204 : vector<16x32xf32>
    %c0_56 = arith.constant 0 : index
    %c0_57 = arith.constant 0 : index
    %206 = vector.load %arg10[%c0_56, %c0_57] : memref<1x32xf32, #tpu.memory_space<vmem>>, vector<1x32xf32>
    %c0_58 = arith.constant 0 : index
    %c0_59 = arith.constant 0 : index
    %207 = vector.load %arg11[%c0_58, %c0_59] : memref<1x32xf32, #tpu.memory_space<vmem>>, vector<1x32xf32>
    %cst_60 = arith.constant dense<0.000000e+00> : vector<16xf32>
    %208 = vector.multi_reduction <add>, %205, %cst_60 [1] : vector<16x32xf32> to vector<16xf32>
    %209 = vector.shape_cast %208 : vector<16xf32> to vector<16x1xf32>
    %cst_61 = arith.constant 3.200000e+01 : f32
    %210 = vector.broadcast %cst_61 : f32 to vector<16x1xf32>
    %211 = arith.divf %209, %210 : vector<16x1xf32>
    %212 = vector.broadcast %211 : vector<16x1xf32> to vector<16x32xf32>
    %213 = arith.subf %205, %212 : vector<16x32xf32>
    %214 = arith.mulf %213, %213 : vector<16x32xf32>
    %cst_62 = arith.constant dense<0.000000e+00> : vector<16xf32>
    %215 = vector.multi_reduction <add>, %214, %cst_62 [1] : vector<16x32xf32> to vector<16xf32>
    %216 = vector.shape_cast %215 : vector<16xf32> to vector<16x1xf32>
    %cst_63 = arith.constant 3.200000e+01 : f32
    %217 = vector.broadcast %cst_63 : f32 to vector<16x1xf32>
    %218 = arith.divf %216, %217 : vector<16x1xf32>
    %cst_64 = arith.constant 9.99999974E-6 : f32
    %219 = vector.broadcast %cst_64 : f32 to vector<16x1xf32>
    %220 = arith.addf %218, %219 : vector<16x1xf32>
    %221 = math.rsqrt %220 : vector<16x1xf32>
    %222 = vector.broadcast %221 : vector<16x1xf32> to vector<16x32xf32>
    %223 = arith.mulf %213, %222 : vector<16x32xf32>
    %224 = vector.broadcast %206 : vector<1x32xf32> to vector<16x32xf32>
    %225 = arith.mulf %223, %224 : vector<16x32xf32>
    %226 = vector.broadcast %207 : vector<1x32xf32> to vector<16x32xf32>
    %227 = arith.addf %225, %226 : vector<16x32xf32>
    %c0_65 = arith.constant 0 : index
    %c0_66 = arith.constant 0 : index
    %228 = vector.load %arg6[%c0_65, %c0_66] : memref<32x128xf32, #tpu.memory_space<vmem>>, vector<32x128xf32>
    %cst_67 = arith.constant dense<0.000000e+00> : vector<16x128xf32>
    %229 = tpu.matmul %227, %228, %cst_67 {dimension_numbers = #tpu.dot_dimension_numbers<[1], [0], [0], [1], [0, 0, 1, 1], [], []>} : vector<16x32xf32>, vector<32x128xf32>, vector<16x128xf32> -> vector<16x128xf32>
    %c0_68 = arith.constant 0 : index
    %c0_69 = arith.constant 0 : index
    %230 = vector.load %arg7[%c0_68, %c0_69] : memref<1x128xf32, #tpu.memory_space<vmem>>, vector<1x128xf32>
    %231 = vector.broadcast %230 : vector<1x128xf32> to vector<16x128xf32>
    %232 = arith.addf %229, %231 : vector<16x128xf32>
    %cst_70 = arith.constant 0.000000e+00 : f32
    %233 = vector.broadcast %cst_70 : f32 to vector<16x128xf32>
    %234 = arith.maximumf %232, %233 : vector<16x128xf32>
    %c0_71 = arith.constant 0 : index
    %c0_72 = arith.constant 0 : index
    %235 = vector.load %arg8[%c0_71, %c0_72] : memref<128x32xf32, #tpu.memory_space<vmem>>, vector<128x32xf32>
    %cst_73 = arith.constant dense<0.000000e+00> : vector<16x32xf32>
    %236 = tpu.matmul %234, %235, %cst_73 {dimension_numbers = #tpu.dot_dimension_numbers<[1], [0], [0], [1], [0, 0, 1, 1], [], []>} : vector<16x128xf32>, vector<128x32xf32>, vector<16x32xf32> -> vector<16x32xf32>
    %c0_74 = arith.constant 0 : index
    %c0_75 = arith.constant 0 : index
    %237 = vector.load %arg9[%c0_74, %c0_75] : memref<1x32xf32, #tpu.memory_space<vmem>>, vector<1x32xf32>
    %238 = vector.broadcast %237 : vector<1x32xf32> to vector<16x32xf32>
    %239 = arith.addf %236, %238 : vector<16x32xf32>
    %240 = arith.addf %227, %239 : vector<16x32xf32>
    %c0_76 = arith.constant 0 : index
    %c0_77 = arith.constant 0 : index
    %241 = vector.load %arg12[%c0_76, %c0_77] : memref<1x32xf32, #tpu.memory_space<vmem>>, vector<1x32xf32>
    %c0_78 = arith.constant 0 : index
    %c0_79 = arith.constant 0 : index
    %242 = vector.load %arg13[%c0_78, %c0_79] : memref<1x32xf32, #tpu.memory_space<vmem>>, vector<1x32xf32>
    %cst_80 = arith.constant dense<0.000000e+00> : vector<16xf32>
    %243 = vector.multi_reduction <add>, %240, %cst_80 [1] : vector<16x32xf32> to vector<16xf32>
    %244 = vector.shape_cast %243 : vector<16xf32> to vector<16x1xf32>
    %cst_81 = arith.constant 3.200000e+01 : f32
    %245 = vector.broadcast %cst_81 : f32 to vector<16x1xf32>
    %246 = arith.divf %244, %245 : vector<16x1xf32>
    %247 = vector.broadcast %246 : vector<16x1xf32> to vector<16x32xf32>
    %248 = arith.subf %240, %247 : vector<16x32xf32>
    %249 = arith.mulf %248, %248 : vector<16x32xf32>
    %cst_82 = arith.constant dense<0.000000e+00> : vector<16xf32>
    %250 = vector.multi_reduction <add>, %249, %cst_82 [1] : vector<16x32xf32> to vector<16xf32>
    %251 = vector.shape_cast %250 : vector<16xf32> to vector<16x1xf32>
    %cst_83 = arith.constant 3.200000e+01 : f32
    %252 = vector.broadcast %cst_83 : f32 to vector<16x1xf32>
    %253 = arith.divf %251, %252 : vector<16x1xf32>
    %cst_84 = arith.constant 9.99999974E-6 : f32
    %254 = vector.broadcast %cst_84 : f32 to vector<16x1xf32>
    %255 = arith.addf %253, %254 : vector<16x1xf32>
    %256 = math.rsqrt %255 : vector<16x1xf32>
    %257 = vector.broadcast %256 : vector<16x1xf32> to vector<16x32xf32>
    %258 = arith.mulf %248, %257 : vector<16x32xf32>
    %259 = vector.broadcast %241 : vector<1x32xf32> to vector<16x32xf32>
    %260 = arith.mulf %258, %259 : vector<16x32xf32>
    %261 = vector.broadcast %242 : vector<1x32xf32> to vector<16x32xf32>
    %262 = arith.addf %260, %261 : vector<16x32xf32>
    %263 = vector.shape_cast %262 : vector<16x32xf32> to vector<2x8x32xf32>
    %c0_85 = arith.constant 0 : index
    %c0_86 = arith.constant 0 : index
    %c0_87 = arith.constant 0 : index
    %264 = vector.load %arg15[%c0_85, %c0_86, %c0_87] : memref<2x8x32xf32, #tpu.memory_space<vmem>>, vector<2x8x32xf32>
    tpu.vector_store %arg15[%c0_85, %c0_86, %c0_87], %263 {strides = array<i32>} : memref<2x8x32xf32, #tpu.memory_space<vmem>>, vector<2x8x32xf32>,
    return
  }
  func.func @transform_0(%arg0: i32) -> (i32, i32, i32) {
    %c0_i32 = arith.constant 0 : i32
    %c0_i32_0 = arith.constant 0 : i32
    %c0_i32_1 = arith.constant 0 : i32
    return %arg0, %c0_i32, %c0_i32_0 : i32, i32, i32
  }
  func.func @transform_1(%arg0: i32) -> (i32, i32) {
    %c0_i32 = arith.constant 0 : i32
    %c0_i32_0 = arith.constant 0 : i32
    %c0_i32_1 = arith.constant 0 : i32
    return %c0_i32, %c0_i32_0 : i32, i32
  }
  func.func @transform_2(%arg0: i32) -> (i32, i32) {
    %c0_i32 = arith.constant 0 : i32
    %c0_i32_0 = arith.constant 0 : i32
    %c0_i32_1 = arith.constant 0 : i32
    return %c0_i32, %c0_i32_0 : i32, i32
  }
  func.func @transform_3(%arg0: i32) -> (i32, i32) {
    %c0_i32 = arith.constant 0 : i32
    %c0_i32_0 = arith.constant 0 : i32
    %c0_i32_1 = arith.constant 0 : i32
    return %c0_i32, %c0_i32_0 : i32, i32
  }
  func.func @transform_4(%arg0: i32) -> (i32, i32) {
    %c0_i32 = arith.constant 0 : i32
    %c0_i32_0 = arith.constant 0 : i32
    %c0_i32_1 = arith.constant 0 : i32
    return %c0_i32, %c0_i32_0 : i32, i32
  }
  func.func @transform_5(%arg0: i32) -> (i32, i32) {
    %c0_i32 = arith.constant 0 : i32
    %c0_i32_0 = arith.constant 0 : i32
    %c0_i32_1 = arith.constant 0 : i32
    return %c0_i32, %c0_i32_0 : i32, i32
  }
  func.func @transform_6(%arg0: i32) -> (i32, i32) {
    %c0_i32 = arith.constant 0 : i32
    %c0_i32_0 = arith.constant 0 : i32
    %c0_i32_1 = arith.constant 0 : i32
    return %c0_i32, %c0_i32_0 : i32, i32
  }
  func.func @transform_7(%arg0: i32) -> (i32, i32) {
    %c0_i32 = arith.constant 0 : i32
    %c0_i32_0 = arith.constant 0 : i32
    %c0_i32_1 = arith.constant 0 : i32
    return %c0_i32, %c0_i32_0 : i32, i32
  }
  func.func @transform_8(%arg0: i32) -> (i32, i32) {
    %c0_i32 = arith.constant 0 : i32
    %c0_i32_0 = arith.constant 0 : i32
    %c0_i32_1 = arith.constant 0 : i32
    return %c0_i32, %c0_i32_0 : i32, i32
  }
  func.func @transform_9(%arg0: i32) -> (i32, i32) {
    %c0_i32 = arith.constant 0 : i32
    %c0_i32_0 = arith.constant 0 : i32
    %c0_i32_1 = arith.constant 0 : i32
    return %c0_i32, %c0_i32_0 : i32, i32
  }
  func.func @transform_10(%arg0: i32) -> (i32, i32) {
    %c0_i32 = arith.constant 0 : i32
    %c0_i32_0 = arith.constant 0 : i32
    %c0_i32_1 = arith.constant 0 : i32
    return %c0_i32, %c0_i32_0 : i32, i32
  }
  func.func @transform_11(%arg0: i32) -> (i32, i32) {
    %c0_i32 = arith.constant 0 : i32
    %c0_i32_0 = arith.constant 0 : i32
    %c0_i32_1 = arith.constant 0 : i32
    return %c0_i32, %c0_i32_0 : i32, i32
  }
  func.func @transform_12(%arg0: i32) -> (i32, i32) {
    %c0_i32 = arith.constant 0 : i32
    %c0_i32_0 = arith.constant 0 : i32
    %c0_i32_1 = arith.constant 0 : i32
    return %c0_i32, %c0_i32_0 : i32, i32
  }
  func.func @transform_13(%arg0: i32) -> i32 {
    %c0_i32 = arith.constant 0 : i32
    %c0_i32_0 = arith.constant 0 : i32
    return %c0_i32 : i32
  }
  func.func @transform_14(%arg0: i32) -> (i32, i32, i32) {
    %c0_i32 = arith.constant 0 : i32
    %c0_i32_0 = arith.constant 0 : i32
    %c0_i32_1 = arith.constant 0 : i32
    return %arg0, %c0_i32, %c0_i32_0 : i32, i32, i32
  }
}

</mosaic_0001>

<bundles_post_ra>
// kernel: tpu_custom_call.1
= control target key start
LH: loop header
LB: loop body
LE: loop exit
PB: predicated region body
PF: predicated region fallthrough
CT: control target
= control target key end

     0   :  { %v3869_v7 = vmov 0.0   ;;  %s4493_s0 = inlined_call_operand.vmem [shape: f32[2,8,32], index: 0, kind: input, shape index: {}]   ;;  %s4494_s1 = inlined_call_operand.vmem [shape: f32[32,192], index: 1, kind: input, shape index: {}]   ;;  %s4495_s2 = inlined_call_operand.vmem [shape: f32[1,192], index: 2, kind: input, shape index: {}]   ;;  %s4496_s3 = inlined_call_operand.vmem [shape: f32[64,32], index: 3, kind: input, shape index: {}]   ;;  %s4497_s4 = inlined_call_operand.vmem [shape: f32[2,32], index: 4, kind: input, shape index: {}]   ;;  %s4498_s5 = inlined_call_operand.vmem [shape: f32[32,128], index: 5, kind: input, shape index: {}]   ;;  %s4499_s6 = inlined_call_operand.vmem [shape: f32[1,128], index: 6, kind: input, shape index: {}]   ;;  %s4500_s7 = inlined_call_operand.vmem [shape: f32[128,32], index: 7, kind: input, shape index: {}]   ;;  %s4501_s8 = inlined_call_operand.vmem [shape: f32[1,32], index: 8, kind: input, shape index: {}]   ;;  %s4502_s9 = inlined_call_operand.vmem [shape: f32[1,32], index: 9, kind: input, shape index: {}]   ;;  %s4503_s10 = inlined_call_operand.vmem [shape: f32[1,32], index: 10, kind: input, shape index: {}]   ;;  %s4504_s11 = inlined_call_operand.vmem [shape: f32[1,32], index: 11, kind: input, shape index: {}]   ;;  %s4505_s12 = inlined_call_operand.vmem [shape: f32[1,32], index: 12, kind: input, shape index: {}]   ;;  %s4506_s13 = inlined_call_operand.<no memory space> [shape: f32[1], index: 13, kind: input, shape index: {}]   ;;  %s4507_s14 = inlined_call_operand.hbm [shape: f32[2,8,32], index: 14, kind: output, shape index: {}]  }
   0x1   :  { %v52_v0 = vld [vmem:[%s4494_s1 + $0x8] sm:$0xff]  ;;  %v54_v1 = vld [vmem:[%s4494_s1 + $0x18] sm:$0xff]  ;;  %v51_v2 = vld [vmem:[%s4494_s1] sm:$0xff]  ;;  %142 = vmatprep.mubr.f32.mxu1 %v3869_v7  ;;  %3474 = vmatprep.subr.mxu0 %v3869_v7 }
   0x2   :  { %v3684_v3 = vpack.c.bf16 %v54_v1, %v52_v0  ;;  %v53_v4 = vld [vmem:[%s4494_s1 + $0x10] sm:$0xff]  ;;  %v56_v5 = vld [vmem:[%s4494_s1 + $0x28] sm:$0xff]  ;;  %v58_v6 = vld [vmem:[%s4494_s1 + $0x38] sm:$0xff] }
   0x3   :  { %v3686_v8 = vpack.c.bf16 %v53_v4, %v51_v2  ;;  %v3688_v9 = vpack.c.bf16 %v58_v6, %v56_v5  ;;  %v55_v10 = vld [vmem:[%s4494_s1 + $0x20] sm:$0xff]  ;;  %v57_v11 = vld [vmem:[%s4494_s1 + $0x30] sm:$0xff] }
   0x4   :  { %3685 = vmatprep.subr.bf16.mxu1 %v3684_v3 }
   0x5   :  { %20 = vsyncpa [#allocation4], 0  ;;  %3687 = vmatpush1.bf16.msra.mxu1 %v3686_v8  ;;  %v3690_v12 = vpack.c.bf16 %v57_v11, %v55_v10  ;;  %v49_v13 = vld [vmem:[%s4493_s0] sm:$0xff]  ;;  %vm71_vm0 = vcmask 261120   ;;  %v50_v14 = vld [vmem:[%s4493_s0 + $0x8] sm:$0xff]  ;;  %v61_v15 = vlaneseq  ;;  %vm3870_vm1 = vmmov 0  }
   0x6   :  { %3689 = vmatprep.subr.bf16.mxu1 %v3688_v9  ;;  %3476 = vmatprep.mubr.msk.f32.mxu0 %vm3870_vm1, %v3869_v7  ;;  %v4011_v18 = vld [vmem:[%s4495_s2] sm:$0x3]  ;;  %s3871_s18 = smov 96   ;;  %vm158_vm2 = vcmask 64512   ;;  %s3872_s2 = smov 64   ;;  %vm1511_vm3 = vcmask 195584  }
   0x7   :  { %v3999_v16 = vshrl.u32 %v61_v15, 7  ;;  %s3873_s19 = smov 88   ;;  %s3874_s20 = smov 120   ;;  %vm1508_vm4 = vcmask 130048   ;;  %vm2907_vm5 = vcmask 523264  }
   0x8   :  { %s3875_s21 = smov 56   ;;  %s3876_s22 = smov 80  }
   0x9   :  { %3691 = vmatpush1.bf16.msra.mxu1 %v3690_v12  ;;  %v4006_v17 = vsub.s32 0, %v3999_v16  ;;  %s3877_s23 = smov 112   ;;  %s3878_s24 = smov 48  }
   0xa   :  { %3459 = vmatprep.subr.mxu1 %v3869_v7  ;;  %s3879_s25 = smov 72   ;;  %s3880_s26 = smov 104  }
   0xb   :  { %v64_v19 = vrot.slane %v4011_v18, %v4006_v17  ;;  %s3881_s27 = smov 40   ;;  %s3882_s28 = smov 32  }
   0xc   :  { %3300 = vmatmul.mubr.msk.f32.vlgmr.msra.gmra.mrb[0].mxu1 %vm71_vm0, %v49_v13  ;;  %s3883_s29 = smov 24   ;;  %s3884_s30 = smov 16  }
   0xd   :  { %148 = vmatprep.mubr.f32.mxu1 %v3869_v7  ;;  %s3885_s15 = smov 8  }
  0x10   :  { %3301 = vmatmul.mubr.msk.f32.gmra.mrb[2].mxu1 %vm71_vm0, %v50_v14 }
  0x11   :  { %3461 = vmatprep.mubr.msk.f32.mxu1 %vm3870_vm1, %v3869_v7 }
  0xdf   :  { %v144_v20 = vpop.f32.mrb[0].mxu1 }
  0xe0   :  { %v4015_v21 = vadd.f32 %v144_v20, %v64_v19  ;;  %v4017_v22 = vpop.f32.mrb[1].mxu1 }
  0xe2   :  { %156 = vrot.lane.b32.xlu0 %v4015_v21, %s3871_s18 }
  0xe3   :  { %v150_v23 = vpop.f32.mrb[2].mxu1 }
  0xe4   :  { %v4021_v24 = vadd.f32 %v150_v23, %v64_v19  ;;  %v4023_v25 = vpop.f32.mrb[3].mxu1 }
  0xe6   :  { %234 = vrot.lane.b32.xlu0 %v4021_v24, %s3871_s18 }
 0x154   :  { %v157_v26 = vpop.permute.xlu0 %156 }
 0x155   :  { %3460 = vmatpush3.xpose.msk.msra.mxu1 %vm158_vm2, %v157_v26 }
 0x156   :  { %3464 = vmatprep.subr.mxu1 %v3869_v7 }
 0x158   :  { %3462 = vmatmul.mubr.msk.f32.vlgmr.msra.gmra.mrb[4].mxu1 %vm158_vm2, %v4015_v21  ;;  %v235_v27 = vpop.permute.xlu0 %234 }
 0x159   :  { %3465 = vmatpush3.xpose.msk.msra.mxu1 %vm158_vm2, %v235_v27  ;;  %3466 = vmatprep.mubr.msk.f32.mxu1 %vm3870_vm1, %v3869_v7 }
 0x15a   :  { %3469 = vmatprep.subr.mxu1 %v3869_v7 }
 0x15c   :  { %3467 = vmatmul.mubr.msk.f32.vlgmr.msra.gmra.mrb[6].mxu1 %vm158_vm2, %v4021_v24 }
 0x15d   :  { %3471 = vmatprep.mubr.msk.f32.mxu1 %vm3870_vm1, %v3869_v7 }
 0x22b   :  { %v229_v28 = vpop.f32.mrb[4].mxu1 }
 0x22c   :  { %v310_v29 = vmul.f32 0.35355338, %v229_v28  ;;  %v3463_v30 = vpop.f32.mrb[5].mxu1 }
 0x22e   :  { %v312_v31 = vsel %vm158_vm2, %v310_v29, -inf }
 0x22f   :  { %313 = vmax.xlane.f32.xlu1 %v312_v31  ;;  %v306_v32 = vpop.f32.mrb[6].mxu1 }
 0x230   :  { %v311_v33 = vmul.f32 0.35355338, %v306_v32  ;;  %v3468_v34 = vpop.f32.mrb[7].mxu1 }
 0x232   :  { %v315_v35 = vsel %vm158_vm2, %v311_v33, -inf }
 0x233   :  { %316 = vmax.xlane.f32.xlu1 %v315_v35 }
 0x244   :  { %334 = vrot.lane.b32.xlu1 %v4015_v21, %s3872_s2 }
 0x248   :  { %410 = vrot.lane.b32.xlu1 %v4021_v24, %s3872_s2 }
 0x24c   :  { %488 = vrot.lane.b32.xlu1 %v4015_v21, %s3873_s19 }
 0x250   :  { %566 = vrot.lane.b32.xlu1 %v4021_v24, %s3873_s19 }
 0x2bc   :  { %v314_v36 = vpop.xlane.xlu1 %313 }
 0x2bd   :  { %v318_v37 = vsub.f32 %v310_v29, %v314_v36 }
 0x2bf   :  { %v320_v38 = vmul.f32 1.442695, %v318_v37 }
 0x2c0   :  { %v317_v39 = vpop.xlane.xlu1 %316 }
 0x2c1   :  { %3767 = vpow2.f32 %v320_v38  ;;  %v319_v40 = vsub.f32 %v311_v33, %v317_v39 }
 0x2c3   :  { %v322_v41 = vmul.f32 1.442695, %v319_v40 }
 0x2c4   :  { %v335_v42 = vpop.permute.xlu1 %334 }
 0x2c5   :  { %3769 = vpow2.f32 %v322_v41  ;;  %3470 = vmatpush3.msra.mxu1 %v335_v42 }
 0x2c6   :  { %3479 = vmatprep.subr.mxu1 %v3869_v7 }
 0x2c8   :  { %v411_v43 = vpop.permute.xlu1 %410 }
 0x2c9   :  { %3475 = vmatpush3.msra.mxu0 %v411_v43 }
 0x2ca   :  { %3484 = vmatprep.subr.mxu0 %v3869_v7 }
 0x2cb   :  { %v3768_v44 = vpop.eup %3767 }
 0x2cc   :  { %v324_v45 = vsel %vm158_vm2, %v3768_v44, 0.0  ;;  %v489_v48 = vpop.permute.xlu1 %488 }
 0x2cd   :  { %325 = vadd.xlane.f32.xlu0 %v324_v45 }
 0x2cf   :  { %v3770_v46 = vpop.eup %3769 }
 0x2d0   :  { %v327_v47 = vsel %vm158_vm2, %v3770_v46, 0.0  ;;  %v567_v49 = vpop.permute.xlu1 %566 }
 0x2d1   :  { %328 = vadd.xlane.f32.xlu1 %v327_v47 }
 0x2e2   :  { %564 = vrot.lane.b32.xlu1 %v4021_v24, %s3874_s20 }
 0x2e3   :  { %486 = vrot.lane.b32.xlu0 %v4015_v21, %s3874_s20 }
 0x35a   :  { %v326_v50 = vpop.xlane.xlu0 %325 }
 0x35b   :  { %3771 = vrcp.f32 %v326_v50 }
 0x35e   :  { %v329_v51 = vpop.xlane.xlu1 %328  ;;  %v487_v56 = vpop.permute.xlu0 %486 }
 0x35f   :  { %3773 = vrcp.f32 %v329_v51 }
 0x362   :  { %v565_v57 = vpop.permute.xlu1 %564 }
 0x365   :  { %v3772_v52 = vpop.eup %3771 }
 0x366   :  { %v332_v53 = vmul.f32 %v3772_v52, %v3768_v44 }
 0x368   :  { %3472 = vmatmul.mubr.msk.f32.vlgmr.msra.gmra.mrb[8].mxu1 %vm158_vm2, %v332_v53 }
 0x369   :  { %v3774_v54 = vpop.eup %3773  ;;  %3480 = vmatpush3.xpose.msk.msra.mxu1 %vm158_vm2, %v489_v48  ;;  %3481 = vmatprep.mubr.msk.f32.mxu1 %vm3870_vm1, %v3869_v7 }
 0x36a   :  { %v333_v55 = vmul.f32 %v3774_v54, %v3770_v46  ;;  %3489 = vmatprep.subr.mxu1 %v3869_v7 }
 0x36c   :  { %3477 = vmatmul.mubr.msk.f32.vlgmr.msra.gmra.mrb[0].mxu0 %vm158_vm2, %v333_v55  ;;  %3482 = vmatmul.mubr.msk.f32.vlgmr.msra.gmra.mrb[10].mxu1 %vm158_vm2, %v487_v56 }
 0x36d   :  { %3485 = vmatpush3.xpose.msk.msra.mxu0 %vm158_vm2, %v567_v49  ;;  %3486 = vmatprep.mubr.msk.f32.mxu0 %vm3870_vm1, %v3869_v7 }
 0x36e   :  { %3494 = vmatprep.subr.mxu0 %v3869_v7  ;;  %3491 = vmatprep.mubr.msk.f32.mxu1 %vm3870_vm1, %v3869_v7 }
 0x370   :  { %3487 = vmatmul.mubr.msk.f32.vlgmr.msra.gmra.mrb[2].mxu0 %vm158_vm2, %v565_v57 }
 0x371   :  { %3496 = vmatprep.mubr.msk.f32.mxu0 %vm3870_vm1, %v3869_v7 }
 0x43b   :  { %v4071_v58 = vpop.f32.mrb[8].mxu1 }
 0x43c   :  { %v3473_v59 = vpop.f32.mrb[9].mxu1 }
 0x43f   :  { %v4073_v60 = vpop.f32.mrb[0].mxu0  ;;  %v560_v61 = vpop.f32.mrb[10].mxu1 }
 0x440   :  { %v642_v62 = vmul.f32 0.35355338, %v560_v61  ;;  %v3478_v63 = vpop.f32.mrb[1].mxu0  ;;  %v3483_v0 = vpop.f32.mrb[11].mxu1 }
 0x442   :  { %v644_v1 = vsel %vm158_vm2, %v642_v62, -inf }
 0x443   :  { %v638_v2 = vpop.f32.mrb[2].mxu0  ;;  %645 = vmax.xlane.f32.xlu1 %v644_v1 }
 0x444   :  { %v643_v3 = vmul.f32 0.35355338, %v638_v2  ;;  %v3488_v4 = vpop.f32.mrb[3].mxu0 }
 0x446   :  { %v647_v5 = vsel %vm158_vm2, %v643_v3, -inf }
 0x447   :  { %648 = vmax.xlane.f32.xlu0 %v647_v5 }
 0x454   :  { %666 = vrot.lane.b32.xlu1 %v4015_v21, %s3875_s21 }
 0x458   :  { %820 = vrot.lane.b32.xlu1 %v4015_v21, %s3876_s22 }
 0x45c   :  { %898 = vrot.lane.b32.xlu1 %v4021_v24, %s3876_s22 }
 0x45d   :  { %742 = vrot.lane.b32.xlu0 %v4021_v24, %s3875_s21 }
 0x461   :  { %818 = vrot.lane.b32.xlu0 %v4015_v21, %s3877_s23 }
 0x4d0   :  { %v646_v6 = vpop.xlane.xlu1 %645 }
 0x4d1   :  { %v650_v8 = vsub.f32 %v642_v62, %v646_v6 }
 0x4d3   :  { %v652_v9 = vmul.f32 1.442695, %v650_v8 }
 0x4d4   :  { %v667_v10 = vpop.permute.xlu1 %666  ;;  %v649_v11 = vpop.xlane.xlu0 %648 }
 0x4d5   :  { %3775 = vpow2.f32 %v652_v9  ;;  %v651_v12 = vsub.f32 %v643_v3, %v649_v11  ;;  %3490 = vmatpush3.msra.mxu1 %v667_v10 }
 0x4d6   :  { %3499 = vmatprep.subr.mxu1 %v3869_v7 }
 0x4d7   :  { %v654_v13 = vmul.f32 1.442695, %v651_v12 }
 0x4d8   :  { %v743_v14 = vpop.permute.xlu0 %742  ;;  %v821_v26 = vpop.permute.xlu1 %820 }
 0x4d9   :  { %3777 = vpow2.f32 %v654_v13  ;;  %3495 = vmatpush3.msra.mxu0 %v743_v14 }
 0x4da   :  { %3504 = vmatprep.subr.mxu0 %v3869_v7 }
 0x4dc   :  { %v899_v27 = vpop.permute.xlu1 %898  ;;  %v819_v34 = vpop.permute.xlu0 %818 }
 0x4df   :  { %v3776_v15 = vpop.eup %3775 }
 0x4e0   :  { %v656_v19 = vsel %vm158_vm2, %v3776_v15, 0.0 }
 0x4e1   :  { %657 = vadd.xlane.f32.xlu1 %v656_v19 }
 0x4e3   :  { %v3778_v20 = vpop.eup %3777 }
 0x4e4   :  { %v659_v23 = vsel %vm158_vm2, %v3778_v20, 0.0 }
 0x4e5   :  { %660 = vadd.xlane.f32.xlu1 %v659_v23 }
 0x4f6   :  { %896 = vrot.lane.b32.xlu1 %v4021_v24, %s3877_s23 }
 0x56e   :  { %v658_v28 = vpop.xlane.xlu1 %657 }
 0x56f   :  { %3779 = vrcp.f32 %v658_v28 }
 0x572   :  { %v661_v29 = vpop.xlane.xlu1 %660 }
 0x573   :  { %3781 = vrcp.f32 %v661_v29 }
 0x576   :  { %v897_v35 = vpop.permute.xlu1 %896 }
 0x579   :  { %v3780_v30 = vpop.eup %3779 }
 0x57a   :  { %v664_v31 = vmul.f32 %v3780_v30, %v3776_v15 }
 0x57c   :  { %3492 = vmatmul.mubr.msk.f32.vlgmr.msra.gmra.mrb[12].mxu1 %vm158_vm2, %v664_v31 }
 0x57d   :  { %v3782_v32 = vpop.eup %3781  ;;  %3500 = vmatpush3.xpose.msk.msra.mxu1 %vm158_vm2, %v821_v26  ;;  %3501 = vmatprep.mubr.msk.f32.mxu1 %vm3870_vm1, %v3869_v7 }
 0x57e   :  { %v665_v33 = vmul.f32 %v3782_v32, %v3778_v20  ;;  %3509 = vmatprep.subr.mxu1 %v3869_v7 }
 0x580   :  { %3497 = vmatmul.mubr.msk.f32.vlgmr.msra.gmra.mrb[4].mxu0 %vm158_vm2, %v665_v33  ;;  %3502 = vmatmul.mubr.msk.f32.vlgmr.msra.gmra.mrb[14].mxu1 %vm158_vm2, %v819_v34 }
 0x581   :  { %3505 = vmatpush3.xpose.msk.msra.mxu0 %vm158_vm2, %v899_v27  ;;  %3506 = vmatprep.mubr.msk.f32.mxu0 %vm3870_vm1, %v3869_v7 }
 0x582   :  { %3514 = vmatprep.subr.mxu0 %v3869_v7  ;;  %3511 = vmatprep.mubr.msk.f32.mxu1 %vm3870_vm1, %v3869_v7 }
 0x584   :  { %3507 = vmatmul.mubr.msk.f32.vlgmr.msra.gmra.mrb[6].mxu0 %vm158_vm2, %v897_v35 }
 0x585   :  { %3516 = vmatprep.mubr.msk.f32.mxu0 %vm3870_vm1, %v3869_v7 }
 0x64f   :  { %v4107_v36 = vpop.f32.mrb[12].mxu1 }
 0x650   :  { %v3493_v37 = vpop.f32.mrb[13].mxu1 }
 0x653   :  { %v4109_v38 = vpop.f32.mrb[4].mxu0  ;;  %v892_v39 = vpop.f32.mrb[14].mxu1 }
 0x654   :  { %v974_v40 = vmul.f32 0.35355338, %v892_v39  ;;  %v3498_v41 = vpop.f32.mrb[5].mxu0  ;;  %v3503_v42 = vpop.f32.mrb[15].mxu1 }
 0x656   :  { %v976_v43 = vsel %vm158_vm2, %v974_v40, -inf }
 0x657   :  { %v970_v44 = vpop.f32.mrb[6].mxu0  ;;  %977 = vmax.xlane.f32.xlu0 %v976_v43  ;;  %v67_v43 = vsub.s32 1, %v3999_v16 }
 0x658   :  { %v975_v45 = vmul.f32 0.35355338, %v970_v44  ;;  %v3508_v46 = vpop.f32.mrb[7].mxu0 }
 0x65a   :  { %v979_v47 = vsel %vm158_vm2, %v975_v45, -inf }
 0x65b   :  { %980 = vmax.xlane.f32.xlu1 %v979_v47 }
 0x66c   :  { %998 = vrot.lane.b32.xlu1 %v4015_v21, %s3878_s24 }
 0x66d   :  { %1074 = vrot.lane.b32.xlu0 %v4021_v24, %s3878_s24 }
 0x670   :  { %1152 = vrot.lane.b32.xlu1 %v4015_v21, %s3879_s25 }
 0x674   :  { %1230 = vrot.lane.b32.xlu1 %v4021_v24, %s3879_s25 }
 0x678   :  { %1228 = vrot.lane.b32.xlu1 %v4021_v24, %s3880_s26 }
 0x6e4   :  { %v978_v48 = vpop.xlane.xlu0 %977 }
 0x6e5   :  { %v982_v49 = vsub.f32 %v974_v40, %v978_v48 }
 0x6e7   :  { %v984_v50 = vmul.f32 1.442695, %v982_v49 }
 0x6e8   :  { %v981_v51 = vpop.xlane.xlu1 %980  ;;  %v1075_v52 = vpop.permute.xlu0 %1074 }
 0x6e9   :  { %3783 = vpow2.f32 %v984_v50  ;;  %v983_v53 = vsub.f32 %v975_v45, %v981_v51  ;;  %3515 = vmatpush3.msra.mxu0 %v1075_v52  ;;  %v68_v45 = vrot.slane %v4011_v18, %v67_v43 }
 0x6ea   :  { %3524 = vmatprep.subr.mxu0 %v3869_v7 }
 0x6eb   :  { %v986_v54 = vmul.f32 1.442695, %v983_v53  ;;  %v4162_v48 = vadd.f32 %v4017_v22, %v68_v45  ;;  %v4171_v18 = vadd.f32 %v4023_v25, %v68_v45 }
 0x6ec   :  { %v999_v55 = vpop.permute.xlu1 %998 }
 0x6ed   :  { %3785 = vpow2.f32 %v986_v54  ;;  %3510 = vmatpush3.msra.mxu1 %v999_v55 }
 0x6ee   :  { %3519 = vmatprep.subr.mxu1 %v3869_v7 }
 0x6f0   :  { %v1153_v0 = vpop.permute.xlu1 %1152 }
 0x6f3   :  { %v3784_v56 = vpop.eup %3783 }
 0x6f4   :  { %v988_v57 = vsel %vm158_vm2, %v3784_v56, 0.0  ;;  %v1231_v4 = vpop.permute.xlu1 %1230 }
 0x6f5   :  { %989 = vadd.xlane.f32.xlu0 %v988_v57 }
 0x6f7   :  { %v3786_v59 = vpop.eup %3785 }
 0x6f8   :  { %v991_v61 = vsel %vm158_vm2, %v3786_v59, 0.0  ;;  %v1229_v8 = vpop.permute.xlu1 %1228 }
 0x6f9   :  { %992 = vadd.xlane.f32.xlu0 %v991_v61 }
 0x70f   :  { %1150 = vrot.lane.b32.xlu0 %v4015_v21, %s3880_s26 }
 0x782   :  { %v990_v62 = vpop.xlane.xlu0 %989 }
 0x783   :  { %3787 = vrcp.f32 %v990_v62 }
 0x786   :  { %v993_v63 = vpop.xlane.xlu0 %992 }
 0x787   :  { %3789 = vrcp.f32 %v993_v63 }
 0x78a   :  { %v1151_v6 = vpop.permute.xlu0 %1150 }
 0x78d   :  { %v3788_v1 = vpop.eup %3787 }
 0x78e   :  { %v996_v2 = vmul.f32 %v3788_v1, %v3784_v56 }
 0x790   :  { %3512 = vmatmul.mubr.msk.f32.vlgmr.msra.gmra.mrb[16].mxu1 %vm158_vm2, %v996_v2 }
 0x791   :  { %v3790_v3 = vpop.eup %3789  ;;  %3520 = vmatpush3.xpose.msk.msra.mxu1 %vm158_vm2, %v1153_v0  ;;  %3521 = vmatprep.mubr.msk.f32.mxu1 %vm3870_vm1, %v3869_v7 }
 0x792   :  { %v997_v5 = vmul.f32 %v3790_v3, %v3786_v59  ;;  %3529 = vmatprep.subr.mxu1 %v3869_v7 }
 0x794   :  { %3517 = vmatmul.mubr.msk.f32.vlgmr.msra.gmra.mrb[8].mxu0 %vm158_vm2, %v997_v5  ;;  %3522 = vmatmul.mubr.msk.f32.vlgmr.msra.gmra.mrb[18].mxu1 %vm158_vm2, %v1151_v6 }
 0x795   :  { %3525 = vmatpush3.xpose.msk.msra.mxu0 %vm158_vm2, %v1231_v4  ;;  %3526 = vmatprep.mubr.msk.f32.mxu0 %vm3870_vm1, %v3869_v7 }
 0x796   :  { %3534 = vmatprep.subr.mxu0 %v3869_v7  ;;  %3531 = vmatprep.mubr.msk.f32.mxu1 %vm3870_vm1, %v3869_v7 }
 0x798   :  { %3527 = vmatmul.mubr.msk.f32.vlgmr.msra.gmra.mrb[10].mxu0 %vm158_vm2, %v1229_v8 }
 0x799   :  { %3536 = vmatprep.mubr.msk.f32.mxu0 %vm3870_vm1, %v3869_v7 }
 0x863   :  { %v4143_v9 = vpop.f32.mrb[16].mxu1 }
 0x864   :  { %v3513_v10 = vpop.f32.mrb[17].mxu1 }
 0x867   :  { %v4145_v11 = vpop.f32.mrb[8].mxu0  ;;  %v1224_v12 = vpop.f32.mrb[18].mxu1 }
 0x868   :  { %v1306_v13 = vmul.f32 0.35355338, %v1224_v12  ;;  %v3518_v14 = vpop.f32.mrb[9].mxu0  ;;  %v3523_v15 = vpop.f32.mrb[19].mxu1 }
 0x86a   :  { %v1308_v19 = vsel %vm158_vm2, %v1306_v13, -inf }
 0x86b   :  { %v1302_v20 = vpop.f32.mrb[10].mxu0  ;;  %1309 = vmax.xlane.f32.xlu0 %v1308_v19 }
 0x86c   :  { %v1307_v23 = vmul.f32 0.35355338, %v1302_v20  ;;  %v3528_v26 = vpop.f32.mrb[11].mxu0 }
 0x86e   :  { %v1311_v27 = vsel %vm158_vm2, %v1307_v23, -inf }
 0x86f   :  { %1312 = vmax.xlane.f32.xlu1 %v1311_v27 }
 0x880   :  { %1330 = vrot.lane.b32.xlu1 %v4015_v21, %s3881_s27 }
 0x884   :  { %1514 = vrot.lane.b32.xlu1 %v4015_v21, %s3882_s28 }
 0x888   :  { %1591 = vrot.lane.b32.xlu1 %v4021_v24, %s3882_s28 }
 0x8f8   :  { %v1310_v28 = vpop.xlane.xlu0 %1309 }
 0x8f9   :  { %v1314_v29 = vsub.f32 %v1306_v13, %v1310_v28 }
 0x8fb   :  { %v1316_v30 = vmul.f32 1.442695, %v1314_v29 }
 0x8fc   :  { %v1313_v31 = vpop.xlane.xlu1 %1312 }
 0x8fd   :  { %3791 = vpow2.f32 %v1316_v30  ;;  %v1315_v32 = vsub.f32 %v1307_v23, %v1313_v31 }
 0x8ff   :  { %v1318_v33 = vmul.f32 1.442695, %v1315_v32 }
 0x900   :  { %v1331_v34 = vpop.permute.xlu1 %1330 }
 0x901   :  { %3793 = vpow2.f32 %v1318_v33  ;;  %3530 = vmatpush3.msra.mxu1 %v1331_v34 }
 0x902   :  { %3539 = vmatprep.subr.mxu1 %v3869_v7 }
 0x904   :  { %v1515_v50 = vpop.permute.xlu1 %1514 }
 0x907   :  { %v3792_v35 = vpop.eup %3791 }
 0x908   :  { %v1320_v37 = vsel %vm158_vm2, %v3792_v35, 0.0  ;;  %v1592_v22 = vpop.permute.xlu1 %1591 }
 0x909   :  { %1321 = vadd.xlane.f32.xlu0 %v1320_v37 }
 0x90b   :  { %v3794_v39 = vpop.eup %3793 }
 0x90c   :  { %v1323_v40 = vsel %vm158_vm2, %v3794_v39, 0.0 }
 0x90d   :  { %1324 = vadd.xlane.f32.xlu0 %v1323_v40 }
 0x923   :  { %1406 = vrot.lane.b32.xlu0 %v4021_v24, %s3881_s27 }
 0x996   :  { %v1322_v41 = vpop.xlane.xlu0 %1321 }
 0x997   :  { %3795 = vrcp.f32 %v1322_v41 }
 0x99a   :  { %v1325_v42 = vpop.xlane.xlu0 %1324 }
 0x99b   :  { %3797 = vrcp.f32 %v1325_v42 }
 0x99e   :  { %v1407_v44 = vpop.permute.xlu0 %1406 }
 0x99f   :  { %3535 = vmatpush3.msra.mxu0 %v1407_v44 }
 0x9a0   :  { %3544 = vmatprep.subr.mxu0 %v3869_v7 }
 0x9a1   :  { %v3796_v46 = vpop.eup %3795 }
 0x9a2   :  { %v1328_v47 = vmul.f32 %v3796_v46, %v3792_v35 }
 0x9a4   :  { %3532 = vmatmul.mubr.msk.f32.vlgmr.msra.gmra.mrb[20].mxu1 %vm158_vm2, %v1328_v47 }
 0x9a5   :  { %v3798_v49 = vpop.eup %3797  ;;  %3540 = vmatpush3.xpose.msk.msra.mxu1 %vm158_vm2, %v4162_v48  ;;  %3541 = vmatprep.mubr.msk.f32.mxu1 %vm3870_vm1, %v3869_v7 }
 0x9a6   :  { %v1329_v16 = vmul.f32 %v3798_v49, %v3794_v39  ;;  %3549 = vmatprep.subr.mxu1 %v3869_v7 }
 0x9a8   :  { %3537 = vmatmul.mubr.msk.f32.vlgmr.msra.gmra.mrb[12].mxu0 %vm158_vm2, %v1329_v16  ;;  %3542 = vmatmul.mubr.msk.f32.vlgmr.msra.gmra.mrb[22].mxu1 %vm158_vm2, %v1515_v50 }
 0x9a9   :  { %3545 = vmatpush3.xpose.msk.msra.mxu0 %vm158_vm2, %v4171_v18  ;;  %3546 = vmatprep.mubr.msk.f32.mxu0 %vm3870_vm1, %v3869_v7 }
 0x9aa   :  { %3554 = vmatprep.subr.mxu0 %v3869_v7  ;;  %3551 = vmatprep.mubr.msk.f32.mxu1 %vm3870_vm1, %v3869_v7 }
 0x9ac   :  { %3547 = vmatmul.mubr.msk.f32.vlgmr.msra.gmra.mrb[14].mxu0 %vm158_vm2, %v1592_v22 }
 0x9ad   :  { %3556 = vmatprep.mubr.msk.f32.mxu0 %vm3870_vm1, %v3869_v7 }
 0xa77   :  { %v4185_v25 = vpop.f32.mrb[20].mxu1 }
 0xa78   :  { %v3533_v51 = vpop.f32.mrb[21].mxu1 }
 0xa7b   :  { %v4187_v52 = vpop.f32.mrb[12].mxu0  ;;  %v1587_v53 = vpop.f32.mrb[22].mxu1 }
 0xa7c   :  { %v1668_v54 = vmul.f32 0.35355338, %v1587_v53  ;;  %v3538_v55 = vpop.f32.mrb[13].mxu0  ;;  %v3543_v56 = vpop.f32.mrb[23].mxu1 }
 0xa7e   :  { %v1670_v57 = vsel %vm158_vm2, %v1668_v54, -inf }
 0xa7f   :  { %v1664_v59 = vpop.f32.mrb[14].mxu0  ;;  %1671 = vmax.xlane.f32.xlu0 %v1670_v57 }
 0xa80   :  { %v1669_v61 = vmul.f32 0.35355338, %v1664_v59  ;;  %v3548_v62 = vpop.f32.mrb[15].mxu0 }
 0xa82   :  { %v1673_v63 = vsel %vm158_vm2, %v1669_v61, -inf }
 0xa83   :  { %1674 = vmax.xlane.f32.xlu1 %v1673_v63 }
 0xa94   :  { %1692 = vrot.lane.b32.xlu1 %v4162_v48, %s3871_s18 }
 0xa95   :  { %1768 = vrot.lane.b32.xlu0 %v4171_v18, %s3871_s18 }
 0xa98   :  { %1846 = vrot.lane.b32.xlu1 %v4162_v48, %s3874_s20 }
 0xa9c   :  { %1924 = vrot.lane.b32.xlu1 %v4171_v18, %s3874_s20 }
 0xaa0   :  { %1922 = vrot.lane.b32.xlu1 %v4021_v24, %s3883_s29 }
 0xb0c   :  { %v1672_v0 = vpop.xlane.xlu0 %1671 }
 0xb0d   :  { %v1676_v1 = vsub.f32 %v1668_v54, %v1672_v0 }
 0xb0f   :  { %v1678_v2 = vmul.f32 1.442695, %v1676_v1 }
 0xb10   :  { %v1675_v3 = vpop.xlane.xlu1 %1674  ;;  %v1769_v4 = vpop.permute.xlu0 %1768 }
 0xb11   :  { %3799 = vpow2.f32 %v1678_v2  ;;  %v1677_v5 = vsub.f32 %v1669_v61, %v1675_v3  ;;  %3555 = vmatpush3.msra.mxu0 %v1769_v4 }
 0xb12   :  { %3564 = vmatprep.subr.mxu0 %v3869_v7 }
 0xb13   :  { %v1680_v6 = vmul.f32 1.442695, %v1677_v5 }
 0xb14   :  { %v1693_v8 = vpop.permute.xlu1 %1692 }
 0xb15   :  { %3801 = vpow2.f32 %v1680_v6  ;;  %3550 = vmatpush3.msra.mxu1 %v1693_v8 }
 0xb16   :  { %3559 = vmatprep.subr.mxu1 %v3869_v7 }
 0xb18   :  { %v1847_v20 = vpop.permute.xlu1 %1846 }
 0xb1b   :  { %v3800_v10 = vpop.eup %3799 }
 0xb1c   :  { %v1682_v12 = vsel %vm158_vm2, %v3800_v10, 0.0  ;;  %v1925_v28 = vpop.permute.xlu1 %1924 }
 0xb1d   :  { %1683 = vadd.xlane.f32.xlu0 %v1682_v12 }
 0xb1f   :  { %v3802_v13 = vpop.eup %3801 }
 0xb20   :  { %v1685_v14 = vsel %vm158_vm2, %v3802_v13, 0.0  ;;  %v1923_v31 = vpop.permute.xlu1 %1922 }
 0xb21   :  { %1686 = vadd.xlane.f32.xlu0 %v1685_v14 }
 0xb37   :  { %1844 = vrot.lane.b32.xlu0 %v4015_v21, %s3883_s29 }
 0xbaa   :  { %v1684_v15 = vpop.xlane.xlu0 %1683 }
 0xbab   :  { %3803 = vrcp.f32 %v1684_v15 }
 0xbae   :  { %v1687_v19 = vpop.xlane.xlu0 %1686 }
 0xbaf   :  { %3805 = vrcp.f32 %v1687_v19 }
 0xbb2   :  { %v1845_v30 = vpop.permute.xlu0 %1844 }
 0xbb5   :  { %v3804_v23 = vpop.eup %3803 }
 0xbb6   :  { %v1690_v26 = vmul.f32 %v3804_v23, %v3800_v10 }
 0xbb8   :  { %3552 = vmatmul.mubr.msk.f32.vlgmr.msra.gmra.mrb[24].mxu1 %vm158_vm2, %v1690_v26 }
 0xbb9   :  { %v3806_v27 = vpop.eup %3805  ;;  %3560 = vmatpush3.xpose.msk.msra.mxu1 %vm158_vm2, %v1847_v20  ;;  %3561 = vmatprep.mubr.msk.f32.mxu1 %vm3870_vm1, %v3869_v7 }
 0xbba   :  { %v1691_v29 = vmul.f32 %v3806_v27, %v3802_v13  ;;  %3569 = vmatprep.subr.mxu1 %v3869_v7 }
 0xbbc   :  { %3557 = vmatmul.mubr.msk.f32.vlgmr.msra.gmra.mrb[16].mxu0 %vm158_vm2, %v1691_v29  ;;  %3562 = vmatmul.mubr.msk.f32.vlgmr.msra.gmra.mrb[26].mxu1 %vm158_vm2, %v1845_v30 }
 0xbbd   :  { %3565 = vmatpush3.xpose.msk.msra.mxu0 %vm158_vm2, %v1925_v28  ;;  %3566 = vmatprep.mubr.msk.f32.mxu0 %vm3870_vm1, %v3869_v7 }
 0xbbe   :  { %3574 = vmatprep.subr.mxu0 %v3869_v7  ;;  %3571 = vmatprep.mubr.msk.f32.mxu1 %vm3870_vm1, %v3869_v7 }
 0xbc0   :  { %3567 = vmatmul.mubr.msk.f32.vlgmr.msra.gmra.mrb[18].mxu0 %vm158_vm2, %v1923_v31 }
 0xbc1   :  { %3576 = vmatprep.mubr.msk.f32.mxu0 %vm3870_vm1, %v3869_v7 }
 0xc8b   :  { %v4223_v32 = vpop.f32.mrb[24].mxu1 }
 0xc8c   :  { %v3553_v33 = vpop.f32.mrb[25].mxu1 }
 0xc8f   :  { %v4225_v34 = vpop.f32.mrb[16].mxu0  ;;  %v1918_v35 = vpop.f32.mrb[26].mxu1 }
 0xc90   :  { %v2000_v37 = vmul.f32 0.35355338, %v1918_v35  ;;  %v3558_v39 = vpop.f32.mrb[17].mxu0  ;;  %v3563_v40 = vpop.f32.mrb[27].mxu1 }
 0xc92   :  { %v2002_v41 = vsel %vm158_vm2, %v2000_v37, -inf }
 0xc93   :  { %v1996_v42 = vpop.f32.mrb[18].mxu0  ;;  %2003 = vmax.xlane.f32.xlu0 %v2002_v41 }
 0xc94   :  { %v2001_v43 = vmul.f32 0.35355338, %v1996_v42  ;;  %v3568_v44 = vpop.f32.mrb[19].mxu0 }
 0xc96   :  { %v2005_v45 = vsel %vm158_vm2, %v2001_v43, -inf }
 0xc97   :  { %2006 = vmax.xlane.f32.xlu1 %v2005_v45 }
 0xca8   :  { %2024 = vrot.lane.b32.xlu1 %v4162_v48, %s3873_s19 }
 0xca9   :  { %2100 = vrot.lane.b32.xlu0 %v4171_v18, %s3873_s19 }
 0xcac   :  { %2178 = vrot.lane.b32.xlu1 %v4162_v48, %s3877_s23 }
 0xcb0   :  { %2256 = vrot.lane.b32.xlu1 %v4171_v18, %s3877_s23 }
 0xcb4   :  { %2254 = vrot.lane.b32.xlu1 %v4021_v24, %s3884_s30 }
 0xd20   :  { %v2004_v46 = vpop.xlane.xlu0 %2003 }
 0xd21   :  { %v2008_v47 = vsub.f32 %v2000_v37, %v2004_v46 }
 0xd23   :  { %v2010_v49 = vmul.f32 1.442695, %v2008_v47 }
 0xd24   :  { %v2007_v50 = vpop.xlane.xlu1 %2006  ;;  %v2101_v16 = vpop.permute.xlu0 %2100 }
 0xd25   :  { %3807 = vpow2.f32 %v2010_v49  ;;  %v2009_v22 = vsub.f32 %v2001_v43, %v2007_v50  ;;  %3575 = vmatpush3.msra.mxu0 %v2101_v16 }
 0xd26   :  { %3584 = vmatprep.subr.mxu0 %v3869_v7 }
 0xd27   :  { %v2012_v51 = vmul.f32 1.442695, %v2009_v22 }
 0xd28   :  { %v2025_v53 = vpop.permute.xlu1 %2024 }
 0xd29   :  { %3809 = vpow2.f32 %v2012_v51  ;;  %3570 = vmatpush3.msra.mxu1 %v2025_v53 }
 0xd2a   :  { %3579 = vmatprep.subr.mxu1 %v3869_v7 }
 0xd2c   :  { %v2179_v62 = vpop.permute.xlu1 %2178 }
 0xd2f   :  { %v3808_v54 = vpop.eup %3807 }
 0xd30   :  { %v2014_v55 = vsel %vm158_vm2, %v3808_v54, 0.0  ;;  %v2257_v2 = vpop.permute.xlu1 %2256 }
 0xd31   :  { %2015 = vadd.xlane.f32.xlu0 %v2014_v55 }
 0xd33   :  { %v3810_v56 = vpop.eup %3809 }
 0xd34   :  { %v2017_v57 = vsel %vm158_vm2, %v3810_v56, 0.0  ;;  %v2255_v5 = vpop.permute.xlu1 %2254 }
 0xd35   :  { %2018 = vadd.xlane.f32.xlu0 %v2017_v57 }
 0xd4b   :  { %2176 = vrot.lane.b32.xlu0 %v4015_v21, %s3884_s30 }
 0xdbe   :  { %v2016_v59 = vpop.xlane.xlu0 %2015 }
 0xdbf   :  { %3811 = vrcp.f32 %v2016_v59 }
 0xdc2   :  { %v2019_v61 = vpop.xlane.xlu0 %2018 }
 0xdc3   :  { %3813 = vrcp.f32 %v2019_v61 }
 0xdc6   :  { %v2177_v4 = vpop.permute.xlu0 %2176 }
 0xdc9   :  { %v3812_v63 = vpop.eup %3811 }
 0xdca   :  { %v2022_v0 = vmul.f32 %v3812_v63, %v3808_v54 }
 0xdcc   :  { %3572 = vmatmul.mubr.msk.f32.vlgmr.msra.gmra.mrb[28].mxu1 %vm158_vm2, %v2022_v0 }
 0xdcd   :  { %v3814_v1 = vpop.eup %3813  ;;  %3580 = vmatpush3.xpose.msk.msra.mxu1 %vm158_vm2, %v2179_v62  ;;  %3581 = vmatprep.mubr.msk.f32.mxu1 %vm3870_vm1, %v3869_v7 }
 0xdce   :  { %v2023_v3 = vmul.f32 %v3814_v1, %v3810_v56  ;;  %3589 = vmatprep.subr.mxu1 %v3869_v7 }
 0xdd0   :  { %3577 = vmatmul.mubr.msk.f32.vlgmr.msra.gmra.mrb[20].mxu0 %vm158_vm2, %v2023_v3  ;;  %3582 = vmatmul.mubr.msk.f32.vlgmr.msra.gmra.mrb[30].mxu1 %vm158_vm2, %v2177_v4 }
 0xdd1   :  { %3585 = vmatpush3.xpose.msk.msra.mxu0 %vm158_vm2, %v2257_v2  ;;  %3586 = vmatprep.mubr.msk.f32.mxu0 %vm3870_vm1, %v3869_v7 }
 0xdd2   :  { %3594 = vmatprep.subr.mxu0 %v3869_v7  ;;  %3591 = vmatprep.mubr.msk.f32.mxu1 %vm3870_vm1, %v3869_v7 }
 0xdd4   :  { %3587 = vmatmul.mubr.msk.f32.vlgmr.msra.gmra.mrb[22].mxu0 %vm158_vm2, %v2255_v5 }
 0xdd5   :  { %3596 = vmatprep.mubr.msk.f32.mxu0 %vm3870_vm1, %v3869_v7 }
 0xe9f   :  { %v4261_v6 = vpop.f32.mrb[28].mxu1 }
 0xea0   :  { %v3573_v8 = vpop.f32.mrb[29].mxu1 }
 0xea3   :  { %v4263_v10 = vpop.f32.mrb[20].mxu0  ;;  %v2250_v12 = vpop.f32.mrb[30].mxu1 }
 0xea4   :  { %v2332_v13 = vmul.f32 0.35355338, %v2250_v12  ;;  %v3578_v14 = vpop.f32.mrb[21].mxu0  ;;  %v3583_v15 = vpop.f32.mrb[31].mxu1 }
 0xea6   :  { %v2334_v19 = vsel %vm158_vm2, %v2332_v13, -inf }
 0xea7   :  { %v2328_v20 = vpop.f32.mrb[22].mxu0  ;;  %2335 = vmax.xlane.f32.xlu0 %v2334_v19 }
 0xea8   :  { %v2333_v23 = vmul.f32 0.35355338, %v2328_v20  ;;  %v3588_v26 = vpop.f32.mrb[23].mxu0 }
 0xeaa   :  { %v2337_v27 = vsel %vm158_vm2, %v2333_v23, -inf }
 0xeab   :  { %2338 = vmax.xlane.f32.xlu1 %v2337_v27 }
 0xebc   :  { %2356 = vrot.lane.b32.xlu1 %v4162_v48, %s3876_s22 }
 0xebd   :  { %2432 = vrot.lane.b32.xlu0 %v4171_v18, %s3876_s22 }
 0xec0   :  { %2510 = vrot.lane.b32.xlu1 %v4162_v48, %s3880_s26 }
 0xec4   :  { %2588 = vrot.lane.b32.xlu1 %v4171_v18, %s3880_s26 }
 0xec8   :  { %2586 = vrot.lane.b32.xlu1 %v4021_v24, %s3885_s15 }
 0xf34   :  { %v2336_v28 = vpop.xlane.xlu0 %2335 }
 0xf35   :  { %v2340_v29 = vsub.f32 %v2332_v13, %v2336_v28 }
 0xf37   :  { %v2342_v30 = vmul.f32 1.442695, %v2340_v29 }
 0xf38   :  { %v2339_v31 = vpop.xlane.xlu1 %2338  ;;  %v2433_v33 = vpop.permute.xlu0 %2432 }
 0xf39   :  { %3815 = vpow2.f32 %v2342_v30  ;;  %v2341_v35 = vsub.f32 %v2333_v23, %v2339_v31  ;;  %3595 = vmatpush3.msra.mxu0 %v2433_v33  ;;  %v2893_v31 = vld [vmem:[%s4496_s3] sm:$0xff]  ;;  %v2894_v33 = vld [vmem:[%s4496_s3 + $0x8] sm:$0xff] }
 0xf3a   :  { %3604 = vmatprep.subr.mxu0 %v3869_v7 }
 0xf3b   :  { %v2344_v37 = vmul.f32 1.442695, %v2341_v35  ;;  %v3692_v35 = vpack.c.bf16 %v2894_v33, %v2893_v31  ;;  %v3844_v33 = vld [vmem:[%s4493_s0] sm:$0xff] }
 0xf3c   :  { %v2357_v39 = vpop.permute.xlu1 %2356 }
 0xf3d   :  { %3817 = vpow2.f32 %v2344_v37  ;;  %3590 = vmatpush3.msra.mxu1 %v2357_v39  ;;  %v2895_v37 = vld [vmem:[%s4496_s3 + $0x10] sm:$0xff]  ;;  %v2896_v39 = vld [vmem:[%s4496_s3 + $0x18] sm:$0xff] }
 0xf3e   :  { %3599 = vmatprep.subr.mxu1 %v3869_v7 }
 0xf40   :  { %v2511_v45 = vpop.permute.xlu1 %2510 }
 0xf43   :  { %v3816_v40 = vpop.eup %3815 }
 0xf44   :  { %v2346_v41 = vsel %vm158_vm2, %v3816_v40, 0.0  ;;  %v2589_v50 = vpop.permute.xlu1 %2588 }
 0xf45   :  { %2347 = vadd.xlane.f32.xlu0 %v2346_v41  ;;  %v2898_v41 = vld [vmem:[%s4496_s3 + $0x28] sm:$0xff] }
 0xf47   :  { %v3818_v24 = vpop.eup %3817 }
 0xf48   :  { %v2349_v42 = vsel %vm158_vm2, %v3818_v24, 0.0  ;;  %v2587_v22 = vpop.permute.xlu1 %2586 }
 0xf49   :  { %2350 = vadd.xlane.f32.xlu0 %v2349_v42 }
 0xf5f   :  { %2508 = vrot.lane.b32.xlu0 %v4015_v21, %s3885_s15 }
 0xfd2   :  { %v2348_v43 = vpop.xlane.xlu0 %2347 }
 0xfd3   :  { %3819 = vrcp.f32 %v2348_v43 }
 0xfd6   :  { %v2351_v44 = vpop.xlane.xlu0 %2350 }
 0xfd7   :  { %3821 = vrcp.f32 %v2351_v44 }
 0xfda   :  { %v2509_v21 = vpop.permute.xlu0 %2508 }
 0xfdd   :  { %v3820_v46 = vpop.eup %3819 }
 0xfde   :  { %v2354_v47 = vmul.f32 %v3820_v46, %v3816_v40  ;;  %v3696_v40 = vpack.c.bf16 %v2896_v39, %v2895_v37 }
 0xfe0   :  { %3592 = vmatmul.mubr.msk.f32.vlgmr.msra.gmra.mrb[32].mxu1 %vm158_vm2, %v2354_v47 }
 0xfe1   :  { %v3822_v49 = vpop.eup %3821  ;;  %3600 = vmatpush3.xpose.msk.msra.mxu1 %vm158_vm2, %v2511_v45  ;;  %3601 = vmatprep.mubr.msk.f32.mxu1 %vm3870_vm1, %v3869_v7 }
 0xfe2   :  { %v2355_v16 = vmul.f32 %v3822_v49, %v3818_v24  ;;  %3609 = vmatprep.subr.mxu1 %v3869_v7 }
 0xfe4   :  { %3597 = vmatmul.mubr.msk.f32.vlgmr.msra.gmra.mrb[24].mxu0 %vm158_vm2, %v2355_v16  ;;  %3602 = vmatmul.mubr.msk.f32.vlgmr.msra.gmra.mrb[34].mxu1 %vm158_vm2, %v2509_v21 }
 0xfe5   :  { %3605 = vmatpush3.xpose.msk.msra.mxu0 %vm158_vm2, %v2589_v50  ;;  %3606 = vmatprep.mubr.msk.f32.mxu0 %vm3870_vm1, %v3869_v7 }
 0xfe6   :  { %3614 = vmatprep.subr.mxu0 %v3869_v7  ;;  %3611 = vmatprep.mubr.msk.f32.mxu1 %vm3870_vm1, %v3869_v7 }
 0xfe8   :  { %3607 = vmatmul.mubr.msk.f32.vlgmr.msra.gmra.mrb[26].mxu0 %vm158_vm2, %v2587_v22 }
 0xfe9   :  { %3616 = vmatprep.mubr.msk.f32.mxu0 %vm3870_vm1, %v3869_v7 }
0x10b3   :  { %v2428_v51 = vpop.f32.mrb[32].mxu1 }
0x10b4   :  { %v3593_v53 = vpop.f32.mrb[33].mxu1 }
0x10b7   :  { %v2504_v54 = vpop.f32.mrb[24].mxu0  ;;  %v2582_v55 = vpop.f32.mrb[34].mxu1 }
0x10b8   :  { %v2664_v56 = vmul.f32 0.35355338, %v2582_v55  ;;  %v3598_v57 = vpop.f32.mrb[25].mxu0  ;;  %v3603_v59 = vpop.f32.mrb[35].mxu1 }
0x10ba   :  { %v2666_v61 = vsel %vm158_vm2, %v2664_v56, -inf }
0x10bb   :  { %v2660_v62 = vpop.f32.mrb[26].mxu0  ;;  %2667 = vmax.xlane.f32.xlu0 %v2666_v61 }
0x10bc   :  { %v2665_v63 = vmul.f32 0.35355338, %v2660_v62  ;;  %v3608_v0 = vpop.f32.mrb[27].mxu0 }
0x10be   :  { %v2669_v1 = vsel %vm158_vm2, %v2665_v63, -inf }
0x10bf   :  { %2670 = vmax.xlane.f32.xlu1 %v2669_v1 }
0x10d0   :  { %2688 = vrot.lane.b32.xlu1 %v4162_v48, %s3879_s25 }
0x10d4   :  { %2842 = vrot.lane.b32.xlu1 %v4261_v6, %s3885_s15 }
0x10d8   :  { %2844 = vrot.lane.b32.xlu1 %v4263_v10, %s3885_s15 }
0x10dc   :  { %2852 = vrot.lane.b32.xlu1 %v2504_v54, %s3884_s30 }
0x1148   :  { %v2668_v7 = vpop.xlane.xlu0 %2667 }
0x1149   :  { %v2672_v2 = vsub.f32 %v2664_v56, %v2668_v7 }
0x114b   :  { %v2674_v3 = vmul.f32 1.442695, %v2672_v2 }
0x114c   :  { %v2671_v4 = vpop.xlane.xlu1 %2670 }
0x114d   :  { %3823 = vpow2.f32 %v2674_v3  ;;  %v2673_v5 = vsub.f32 %v2665_v63, %v2671_v4 }
0x114f   :  { %v2676_v8 = vmul.f32 1.442695, %v2673_v5 }
0x1150   :  { %v2689_v12 = vpop.permute.xlu1 %2688 }
0x1151   :  { %3825 = vpow2.f32 %v2676_v8  ;;  %3610 = vmatpush3.msra.mxu1 %v2689_v12 }
0x1152   :  { %3693 = vmatprep.subr.bf16.mxu1 %v3692_v35 }
0x1154   :  { %v2843_v44 = vpop.permute.xlu1 %2842 }
0x1155   :  { %v2864_v50 = vsel %vm158_vm2, %v4223_v32, %v2843_v44 }
0x1157   :  { %v3824_v13 = vpop.eup %3823 }
0x1158   :  { %v2678_v48 = vsel %vm158_vm2, %v3824_v13, 0.0  ;;  %v2845_v45 = vpop.permute.xlu1 %2844 }
0x1159   :  { %2679 = vadd.xlane.f32.xlu0 %v2678_v48  ;;  %v2865_v54 = vsel %vm158_vm2, %v4225_v34, %v2845_v45  ;;  %v3046_v45 = vld [vmem:[%s4498_s5 + $0x10] sm:$0xff] }
0x115b   :  { %v3826_v6 = vpop.eup %3825 }
0x115c   :  { %v2681_v14 = vsel %vm158_vm2, %v3826_v6, 0.0  ;;  %v2853_v16 = vpop.permute.xlu1 %2852 }
0x115d   :  { %2682 = vadd.xlane.f32.xlu0 %v2681_v14  ;;  %v2867_v55 = vsel %vm1508_vm4, %v2865_v54, %v2853_v16  ;;  %v2989_v14 = vld [vmem:[%s4497_s4 + $0x1] sm:$0x1] }
0x1173   :  { %2764 = vrot.lane.b32.xlu0 %v4171_v18, %s3879_s25 }
0x1177   :  { %2850 = vrot.lane.b32.xlu0 %v2428_v51, %s3884_s30 }
0x11e6   :  { %v2680_v10 = vpop.xlane.xlu0 %2679 }
0x11e7   :  { %3827 = vrcp.f32 %v2680_v10 }
0x11ea   :  { %v2683_v15 = vpop.xlane.xlu0 %2682 }
0x11eb   :  { %3829 = vrcp.f32 %v2683_v15 }
0x11ee   :  { %v2765_v19 = vpop.permute.xlu0 %2764 }
0x11ef   :  { %3615 = vmatpush3.msra.mxu0 %v2765_v19 }
0x11f1   :  { %v3828_v20 = vpop.eup %3827 }
0x11f2   :  { %v2686_v23 = vmul.f32 %v3828_v20, %v3824_v13  ;;  %v2851_v47 = vpop.permute.xlu0 %2850 }
0x11f3   :  { %v2866_v21 = vsel %vm1508_vm4, %v2864_v50, %v2851_v47  ;;  %v3139_v50 = vld [vmem:[%s4500_s7 + $0x8] sm:$0xff] }
0x11f4   :  { %3612 = vmatmul.mubr.msk.f32.vlgmr.msra.gmra.mrb[36].mxu1 %vm158_vm2, %v2686_v23 }
0x11f5   :  { %v3830_v26 = vpop.eup %3829  ;;  %3695 = vmatpush3.bf16.msra.mxu1 %v3692_v35 }
0x11f6   :  { %v2687_v27 = vmul.f32 %v3830_v26, %v3826_v6  ;;  %3697 = vmatprep.subr.bf16.mxu1 %v3696_v40 }
0x11f8   :  { %3617 = vmatmul.mubr.msk.f32.vlgmr.msra.gmra.mrb[28].mxu0 %vm158_vm2, %v2687_v27 }
0x11f9   :  { %3699 = vmatpush3.bf16.msra.mxu1 %v3696_v40 }
0x12c7   :  { %v2760_v28 = vpop.f32.mrb[36].mxu1 }
0x12c8   :  { %2858 = vrot.lane.b32.xlu0 %v2760_v28, %s3883_s29  ;;  %v3613_v18 = vpop.f32.mrb[37].mxu1 }
0x12cb   :  { %v2836_v29 = vpop.f32.mrb[28].mxu0 }
0x12cc   :  { %2860 = vrot.lane.b32.xlu1 %v2836_v29, %s3883_s29  ;;  %v3618_v30 = vpop.f32.mrb[29].mxu0  ;;  %1484 = vrot.lane.b32.xlu0 %v4107_v36, %s3885_s15  ;;  %v2897_v36 = vld [vmem:[%s4496_s3 + $0x20] sm:$0xff] }
0x12cd   :  { %v3700_v24 = vpack.c.bf16 %v2898_v41, %v2897_v36  ;;  %v3843_v30 = vld [vmem:[%s4493_s0 + $0x8] sm:$0xff] }
0x12cf   :  { %3701 = vmatprep.subr.bf16.mxu1 %v3700_v24 }
0x12d0   :  { %1486 = vrot.lane.b32.xlu1 %v4109_v38, %s3885_s15  ;;  %1492 = vrot.lane.b32.xlu0 %v4143_v9, %s3884_s30  ;;  %v2871_v38 = vstv %s4506_s13 }
0x12d1   :  { %3703 = vmatpush3.bf16.msra.mxu1 %v3700_v24  ;;  %v3350_v9 = vmul.f32 -1.442695, %v2871_v38 }
0x12d3   :  { %3831 = vpow2.f32 %v3350_v9 }
0x12d4   :  { %1494 = vrot.lane.b32.xlu1 %v4145_v11, %s3884_s30  ;;  %1500 = vrot.lane.b32.xlu0 %v4185_v25, %s3883_s29  ;;  %v2899_v11 = vld [vmem:[%s4496_s3 + $0x30] sm:$0xff]  ;;  %v2900_v25 = vld [vmem:[%s4496_s3 + $0x38] sm:$0xff] }
0x12d8   :  { %1502 = vrot.lane.b32.xlu1 %v4187_v52, %s3883_s29  ;;  %v3704_v52 = vpack.c.bf16 %v2900_v25, %v2899_v11  ;;  %v3044_v11 = vld [vmem:[%s4498_s5] sm:$0xff]  ;;  %v3045_v25 = vld [vmem:[%s4498_s5 + $0x8] sm:$0xff] }
0x12da   :  { %3705 = vmatprep.subr.bf16.mxu1 %v3704_v52 }
0x12db   :  { %3707 = vmatpush3.bf16.msra.mxu1 %v3704_v52  ;;  %v3708_v52 = vpack.c.bf16 %v3045_v25, %v3044_v11 }
0x12dd   :  { %v3832_v42 = vpop.eup %3831  ;;  %3709 = vmatprep.subr.bf16.mxu0 %v3708_v52 }
0x12de   :  { %v2875_v43 = vadd.f32 1.0, %v3832_v42  ;;  %3711 = vmatpush3.bf16.msra.mxu0 %v3708_v52 }
0x12e0   :  { %3833 = vrcp.f32 %v2875_v43 }
0x12ea   :  { %v3834_v46 = vpop.eup %3833 }
0x12eb   :  { %v2880_v49 = vsub.f32 1.0, %v3834_v46 }
0x12ed   :  { %v2990_v15 = vmul.f32 %v2989_v14, %v2880_v49  ;;  %v3148_v14 = vld [vmem:[%s4500_s7 + $0x50] sm:$0xff] }
0x12ef   :  { %v2994_v20 = vrot.slane %v2990_v15, %v4006_v17 }
0x133a   :  { %v2859_v22 = vpop.permute.xlu0 %2858 }
0x133b   :  { %v2868_v51 = vsel %vm1511_vm3, %v2866_v21, %v2859_v22 }
0x133c   :  { %v2881_v53 = vmul.f32 %v2880_v49, %v2868_v51 }
0x133e   :  { %v2861_v56 = vpop.permute.xlu1 %2860  ;;  %2885 = vrot.lane.b32.xlu0 %v2881_v53, %s3882_s28  ;;  %v1485_v57 = vpop.permute.xlu0 %1484 }
0x133f   :  { %v2869_v59 = vsel %vm1511_vm3, %v2867_v55, %v2861_v56  ;;  %v1506_v63 = vsel %vm158_vm2, %v4071_v58, %v1485_v57  ;;  %v3353_v57 = vld [vmem:[%s4502_s9] ss:$0 sm:$0xff] }
0x1340   :  { %v2882_v32 = vmul.f32 %v2880_v49, %v2869_v59  ;;  %v3138_v49 = vld [vmem:[%s4500_s7] sm:$0xff] }
0x1341   :  { %v3716_v16 = vpack.c.bf16 %v3139_v50, %v3138_v49 }
0x1342   :  { %2887 = vrot.lane.b32.xlu1 %v2882_v32, %s3882_s28  ;;  %v1487_v61 = vpop.permute.xlu1 %1486  ;;  %v1493_v62 = vpop.permute.xlu0 %1492  ;;  %v3354_v32 = vld [vmem:[%s4503_s10] ss:$0 sm:$0xff] }
0x1343   :  { %v1509_v0 = vsel %vm1508_vm4, %v1506_v63, %v1493_v62  ;;  %v1507_v2 = vsel %vm158_vm2, %v4073_v60, %v1487_v61  ;;  %v2901_v60 = vld [vmem:[%s4497_s4] sm:$0x1]  ;;  %s3886_s4 = smov [#allocation3]  }
0x1344   :  { %v2902_v10 = vmul.f32 %v3834_v46, %v2901_v60  ;;  %s3289_s21 = sshll.u32 %s3886_s4, 4  ;;  %s3290_s21 = int_to_ptr.vmem [resolvable:$true] %s3289_s21 }
0x1345   :  { %s3845_s22 = scalar_lea.vmem %s3290_s21, 256  ;;  %p3850_p1 = scmp.lt.s32.totalorder %s3290_s21, %s3290_s21 }
0x1346   :  { %v1495_v1 = vpop.permute.xlu1 %1494  ;;  %v1501_v34 = vpop.permute.xlu0 %1500  ;;  %v2906_v19 = vrot.slane %v2902_v10, %v4006_v17  ;;  %v3149_v10 = vld [vmem:[%s4500_s7 + $0x58] sm:$0xff]  ;;  %p3846_p0 = scmp.ne.s32.totalorder %s3290_s21, %s3845_s22  ;;  %p3851_p2 = scmp.lt.s32.totalorder %s3845_s22, %s3845_s22 }
0x1347   :  { %v1512_v7 = vsel %vm1511_vm3, %v1509_v0, %v1501_v34  ;;  %v1510_v3 = vsel %vm1508_vm4, %v1507_v2, %v1495_v1  ;;  %v3140_v1 = vld [vmem:[%s4500_s7 + $0x10] sm:$0xff]  ;;  %v3141_v34 = vld [vmem:[%s4500_s7 + $0x18] sm:$0xff]  ;;  %v3736_v15 = vpack.c.bf16 %v3149_v10, %v3148_v14 }
0x1348   :  { %v2878_v8 = vmul.f32 %v3834_v46, %v1512_v7  ;;  %p3852_p3 = por %p3851_p2, %p3850_p1 }
0x134a   :  { %v1503_v4 = vpop.permute.xlu1 %1502  ;;  %p3853_p4 = pnand %p3852_p3, %p3846_p0 }
0x134b   :  { %v1513_v5 = vsel %vm1511_vm3, %v1510_v3, %v1503_v4  ;;  %v3720_v3 = vpack.c.bf16 %v3141_v34, %v3140_v1  ;;  %v3142_v4 = vld [vmem:[%s4500_s7 + $0x20] sm:$0xff] }
0x134c   :  { %v2879_v58 = vmul.f32 %v3834_v46, %v1513_v5  ;;  %v3047_v46 = vld [vmem:[%s4498_s5 + $0x18] sm:$0xff]  ;;  %v3143_v5 = vld [vmem:[%s4500_s7 + $0x28] sm:$0xff] }
0x134d   :  { %v3712_v47 = vpack.c.bf16 %v3047_v46, %v3046_v45 }
0x134f   :  { %3713 = vmatprep.subr.bf16.mxu0 %v3712_v47 }
0x1350   :  { %3715 = vmatpush3.bf16.msra.mxu0 %v3712_v47 }
0x1351   :  { %3717 = vmatprep.subr.bf16.mxu0 %v3716_v16 }
0x13b0   :  { %v2886_v12 = vpop.permute.xlu0 %2885 }
0x13b1   :  { %v2891_v13 = vsel %vm71_vm0, %v2878_v8, %v2886_v12  ;;  %v3724_v8 = vpack.c.bf16 %v3143_v5, %v3142_v4  ;;  %v3144_v12 = vld [vmem:[%s4500_s7 + $0x30] sm:$0xff] }
0x13b2   :  { %3635 = vmatprep.mubr.msk.f32.mxu1 %vm2907_vm5, %v2891_v13  ;;  %v3145_v13 = vld [vmem:[%s4500_s7 + $0x38] sm:$0xff] }
0x13b4   :  { %v2888_v48 = vpop.permute.xlu1 %2887 }
0x13b5   :  { %v2892_v6 = vsel %vm71_vm0, %v2879_v58, %v2888_v48  ;;  %v3728_v58 = vpack.c.bf16 %v3145_v13, %v3144_v12  ;;  %v3146_v48 = vld [vmem:[%s4500_s7 + $0x40] sm:$0xff] }
0x13b6   :  { %3636 = vmatmul.mubr.msk.f32.vlgmr.msra.gmra.mrb[38].mxu1 %vm2907_vm5, %v2892_v6  ;;  %v3147_v6 = vld [vmem:[%s4500_s7 + $0x48] sm:$0xff] }
0x13b7   :  { %v3732_v60 = vpack.c.bf16 %v3147_v6, %v3146_v48 }
0x1489   :  { %v3637_v23 = vpop.f32.mrb[38].mxu1 }
0x148a   :  { %v2986_v26 = vadd.f32 %v3637_v23, %v2906_v19  ;;  %v2980_v27 = vpop.f32.mrb[39].mxu1 }
0x148b   :  { %v2981_v28 = vadd.f32 %v2980_v27, %v2906_v19  ;;  %v3150_v19 = vld [vmem:[%s4500_s7 + $0x60] sm:$0xff]  ;;  %v3153_v27 = vld [vmem:[%s4500_s7 + $0x78] sm:$0xff] }
0x148c   :  { %v2996_v18 = vadd.f32 %v2994_v20, %v2986_v26  ;;  %v3152_v26 = vld [vmem:[%s4500_s7 + $0x70] sm:$0xff] }
0x148d   :  { %v2995_v29 = vadd.f32 %v2994_v20, %v2981_v28  ;;  %v3151_v20 = vld [vmem:[%s4500_s7 + $0x68] sm:$0xff]  ;;  %v3744_v28 = vpack.c.bf16 %v3153_v27, %v3152_v26 }
0x148e   :  { %v2998_v31 = vadd.f32 %v3843_v30, %v2996_v18  ;;  %v3740_v23 = vpack.c.bf16 %v3151_v20, %v3150_v19  ;;  %v3355_v18 = vld [vmem:[%s4499_s6] ss:$0 sm:$0xff] }
0x148f   :  { %v2997_v35 = vadd.f32 %v3844_v33, %v2995_v29 }
0x1490   :  { %v3004_v37 = vsel %vm71_vm0, %v2998_v31, 0.0 }
0x1491   :  { %3005 = vadd.xlane.f32.xlu1 %v3004_v37  ;;  %v3001_v17 = vsel %vm71_vm0, %v2997_v35, 0.0 }
0x1492   :  { %3002 = vadd.xlane.f32.xlu0 %v3001_v17  ;;  %v3358_v17 = vld [vmem:[%s4501_s8] ss:$0 sm:$0xff] }
0x151e   :  { %v3006_v39 = vpop.xlane.xlu1 %3005 }
0x151f   :  { %v3009_v40 = vmul.f32 0.03125, %v3006_v39  ;;  %v3003_v36 = vpop.xlane.xlu0 %3002 }
0x1520   :  { %v3008_v41 = vmul.f32 0.03125, %v3003_v36 }
0x1521   :  { %v3011_v24 = vsub.f32 %v2998_v31, %v3009_v40 }
0x1522   :  { %v3010_v38 = vsub.f32 %v2997_v35, %v3008_v41 }
0x1523   :  { %v3013_v43 = vmul.f32 %v3011_v24, %v3011_v24 }
0x1524   :  { %v3012_v9 = vmul.f32 %v3010_v38, %v3010_v38 }
0x1525   :  { %v3017_v44 = vsel %vm71_vm0, %v3013_v43, 0.0 }
0x1526   :  { %v3014_v42 = vsel %vm71_vm0, %v3012_v9, 0.0 }
0x1527   :  { %3015 = vadd.xlane.f32.xlu0 %v3014_v42 }
0x152b   :  { %3018 = vadd.xlane.f32.xlu0 %v3017_v44 }
0x15b4   :  { %v3016_v21 = vpop.xlane.xlu0 %3015 }
0x15b5   :  { %v3020_v22 = vmul.f32 0.03125, %v3016_v21 }
0x15b7   :  { %v3022_v51 = vadd.f32 1e-05, %v3020_v22 }
0x15b8   :  { %v3019_v53 = vpop.xlane.xlu0 %3018 }
0x15b9   :  { %3835 = vrsqrt.f32 %v3022_v51  ;;  %v3021_v54 = vmul.f32 0.03125, %v3019_v53 }
0x15bb   :  { %v3023_v55 = vadd.f32 1e-05, %v3021_v54 }
0x15bd   :  { %3837 = vrsqrt.f32 %v3023_v55 }
0x15c3   :  { %v3836_v56 = vpop.eup %3835 }
0x15c4   :  { %v3026_v59 = vmul.f32 %v3836_v56, %v3010_v38  ;;  %v3359_v56 = vld [vmem:[%s4504_s11] ss:$0 sm:$0xff] }
0x15c6   :  { %v3034_v61 = vmul.f32 %v3353_v57, %v3026_v59 }
0x15c7   :  { %v3838_v62 = vpop.eup %3837 }
0x15c8   :  { %v3027_v63 = vmul.f32 %v3838_v62, %v3011_v24  ;;  %v3042_v0 = vadd.f32 %v3354_v32, %v3034_v61  ;;  %v3360_v61 = vld [vmem:[%s4505_s12] ss:$0 sm:$0xff] }
0x15ca   :  { %v3035_v7 = vmul.f32 %v3353_v57, %v3027_v63  ;;  %3646 = vmatprep.mubr.msk.f32.mxu0 %vm71_vm0, %v3042_v0 }
0x15cc   :  { %v3043_v2 = vadd.f32 %v3354_v32, %v3035_v7 }
0x15ce   :  { %3647 = vmatmul.mubr.msk.f32.vlgmr.msra.gmra.mrb[30].mxu0 %vm71_vm0, %v3043_v2 }
0x15cf   :  { %3719 = vmatpush3.bf16.msra.mxu0 %v3716_v16 }
0x15d0   :  { %3721 = vmatprep.subr.bf16.mxu0 %v3720_v3 }
0x15d3   :  { %3723 = vmatpush3.bf16.msra.mxu0 %v3720_v3 }
0x15d4   :  { %3725 = vmatprep.subr.bf16.mxu0 %v3724_v8 }
0x15d7   :  { %3727 = vmatpush3.bf16.msra.mxu0 %v3724_v8 }
0x15d8   :  { %3729 = vmatprep.subr.bf16.mxu0 %v3728_v58 }
0x15db   :  { %3731 = vmatpush3.bf16.msra.mxu0 %v3728_v58 }
0x15dc   :  { %3733 = vmatprep.subr.bf16.mxu0 %v3732_v60 }
0x15df   :  { %3735 = vmatpush3.bf16.msra.mxu0 %v3732_v60 }
0x15e0   :  { %3737 = vmatprep.subr.bf16.mxu0 %v3736_v15 }
0x15e3   :  { %3739 = vmatpush3.bf16.msra.mxu0 %v3736_v15 }
0x15e4   :  { %3741 = vmatprep.subr.bf16.mxu0 %v3740_v23 }
0x15e7   :  { %3743 = vmatpush3.bf16.msra.mxu0 %v3740_v23 }
0x15e8   :  { %3745 = vmatprep.subr.bf16.mxu0 %v3744_v28 }
0x15eb   :  { %3747 = vmatpush3.bf16.msra.mxu0 %v3744_v28 }
0x16a1   :  { %v3648_v29 = vpop.f32.mrb[30].mxu0 }
0x16a2   :  { %v3133_v30 = vadd.f32 %v3648_v29, %v3355_v18  ;;  %v3127_v31 = vpop.f32.mrb[31].mxu0 }
0x16a3   :  { %v3128_v33 = vadd.f32 %v3355_v18, %v3127_v31 }
0x16a4   :  { %v3137_v37 = vmax.f32 %v3133_v30, 0.0 }
0x16a5   :  { %v3136_v35 = vmax.f32 %v3128_v33, 0.0 }
0x16a7   :  { %3681 = vmatprep.mubr.f32.mxu0 %v3136_v35 }
0x16a8   :  { %3682 = vmatmul.mubr.f32.vlgmr.msra.gmra.mrb[32].mxu0 %v3137_v37 }
0x177b   :  { %v3683_v39 = vpop.f32.mrb[32].mxu0 }
0x177c   :  { %v3233_v40 = vadd.f32 %v3683_v39, %v3358_v17  ;;  %v3227_v36 = vpop.f32.mrb[33].mxu0 }
0x177d   :  { %v3228_v41 = vadd.f32 %v3358_v17, %v3227_v36 }
0x177e   :  { %v3237_v24 = vadd.f32 %v3233_v40, %v3043_v2 }
0x177f   :  { %v3236_v38 = vadd.f32 %v3228_v41, %v3042_v0 }
0x1780   :  { %v3243_v9 = vsel %vm71_vm0, %v3237_v24, 0.0 }
0x1781   :  { %3244 = vadd.xlane.f32.xlu0 %v3243_v9  ;;  %v3240_v42 = vsel %vm71_vm0, %v3236_v38, 0.0 }
0x1782   :  { %3241 = vadd.xlane.f32.xlu1 %v3240_v42 }
0x180e   :  { %v3245_v43 = vpop.xlane.xlu0 %3244 }
0x180f   :  { %v3247_v44 = vmul.f32 0.03125, %v3245_v43  ;;  %v3242_v11 = vpop.xlane.xlu1 %3241 }
0x1810   :  { %v3246_v25 = vmul.f32 0.03125, %v3242_v11 }
0x1811   :  { %v3249_v52 = vsub.f32 %v3237_v24, %v3247_v44 }
0x1812   :  { %v3248_v45 = vsub.f32 %v3236_v38, %v3246_v25 }
0x1813   :  { %v3251_v46 = vmul.f32 %v3249_v52, %v3249_v52 }
0x1814   :  { %v3250_v47 = vmul.f32 %v3248_v45, %v3248_v45 }
0x1815   :  { %v3255_v49 = vsel %vm71_vm0, %v3251_v46, 0.0 }
0x1816   :  { %3256 = vadd.xlane.f32.xlu0 %v3255_v49  ;;  %v3252_v50 = vsel %vm71_vm0, %v3250_v47, 0.0 }
0x1817   :  { %3253 = vadd.xlane.f32.xlu1 %v3252_v50 }
0x18a3   :  { %v3257_v16 = vpop.xlane.xlu0 %3256 }
0x18a4   :  { %v3259_v21 = vmul.f32 0.03125, %v3257_v16  ;;  %v3254_v22 = vpop.xlane.xlu1 %3253 }
0x18a5   :  { %v3258_v51 = vmul.f32 0.03125, %v3254_v22 }
0x18a6   :  { %v3261_v53 = vadd.f32 1e-05, %v3259_v21 }
0x18a7   :  { %v3260_v54 = vadd.f32 1e-05, %v3258_v51 }
0x18a8   :  { %3839 = vrsqrt.f32 %v3261_v53 }
0x18a9   :  { %3841 = vrsqrt.f32 %v3260_v54 }
0x18b2   :  { %v3840_v55 = vpop.eup %3839 }
0x18b3   :  { %v3842_v57 = vpop.eup %3841  ;;  %v3265_v59 = vmul.f32 %v3840_v55, %v3249_v52 }
0x18b4   :  { %v3264_v32 = vmul.f32 %v3842_v57, %v3248_v45 }
0x18b5   :  { %v3273_v62 = vmul.f32 %v3359_v56, %v3265_v59 }
0x18b6   :  { %v3272_v63 = vmul.f32 %v3359_v56, %v3264_v32 }
0x18b7   :  { %v3281_v0 = vadd.f32 %v3360_v61, %v3273_v62 }
0x18b8   :  { %v3280_v1 = vadd.f32 %v3360_v61, %v3272_v63 }
0x18b9   :  { %3283 = vst.msk [vmem:[#allocation3 + $0x8] sm:$0xff] %vm71_vm0, %v3281_v0 }
0x18ba   :  { %3282 = vst.msk [vmem:[#allocation3] sm:$0xff] %vm71_vm0, %v3280_v1 }
0x18bb   :  { %3856 = shalt.err (!%p3853_p4)
}
0x18bc   :  { %s3857_s23 = scalar_lea.hbm %s4507_s14, 256 }
0x18bd   :  { %p3858_p5 = scmp.ne.s32.totalorder %s4507_s14, %s3857_s23  ;;  %p3861_p6 = scmp.lt.u32.totalorder %s3857_s23, %s4507_s14 }
0x18bf   :  { %p3863_p7 = pnand %p3861_p6, %p3858_p5 }
0x18c1   :  { %3866 = shalt.err (!%p3863_p7)
}
0x18c2   :  { %s3887_s30 = smov 128  }
0x18c3   :  { %3295 = dma.vmem_to_hbm [thread:$0]  %s3290_s21, 256, %s4507_s14, [#allocation4], %s3887_s30, %s3887_s30, %s3885_s15  }
0x18c4   :  { %3867 = dma.done.wait [#allocation4], 256  }
0x18c5   :  { %3868 = vsyncadd [#allocation4], 4294967040 }
0x18c6   :  { %3299 = vsyncpa [#allocation4], 1 }

</bundles_post_ra>
